<compile_context>
chip_gen: v6e
topology: v6e:2x2x1
jax: 0.10.0
libtpu: 0.0.40
codegen_flags: <defaults>
</compile_context>

<pallas_src>
from functools import partial

import jax
import jax.numpy as jnp
from jax.experimental import pallas as pl
from jax.experimental.pallas import tpu as pltpu

BF16 = jnp.bfloat16
EXACT_GELU = False                      # True -> erf-poly GELU (closer to torch), more VALU work
HEAD_COUT = (64, 32, 4)                 # RecTracHead3 stage output channels
HEAD_ACTS = ("gelu", "gelu", "softplus_ch2")
TRUNK_VMEM_LIMIT = 48 * 1024 * 1024     # > 16/32 MiB scoped defaults, < v7x 64 MiB physical


def _phase_cp(cout):
    """Smallest lane-dense per-phase channel pad: cp >= cout and 4*cp % 128 == 0."""
    return max(32, ((cout + 31) // 32) * 32)


# ----------------------------------------------------------------------------
# Elementwise math helpers (f32, VPU/EUP)
# ----------------------------------------------------------------------------
def _erf_approx(x):
    # Abramowitz & Stegun 7.1.26, |err| < 1.5e-7.
    a1, a2, a3, a4, a5 = 0.254829592, -0.284496736, 1.421413741, -1.453152027, 1.061405429
    p = 0.3275911
    ax = jnp.abs(x)
    t = 1.0 / (1.0 + p * ax)
    poly = ((((a5 * t + a4) * t + a3) * t + a2) * t + a1) * t
    y = 1.0 - poly * jnp.exp(-ax * ax)
    return jnp.where(x >= 0.0, y, -y)


def _gelu(x):
    if EXACT_GELU:
        # torch.nn.GELU() exact (erf) form via f32 polynomial.
        return 0.5 * x * (1.0 + _erf_approx(x * 0.7071067811865476))
    # tanh-GELU: 1 EUP tanh + few VALU ops; deviates from exact erf GELU by <~1e-3.
    c = 0.7978845608028654  # sqrt(2/pi)
    return 0.5 * x * (1.0 + jnp.tanh(c * (x + 0.044715 * x * x * x)))


def _softplus(x):
    # torch.nn.Softplus() with threshold=20 behavior; log1p for small-x accuracy.
    return jnp.where(x > 20.0, x, jnp.log1p(jnp.exp(jnp.minimum(x, 20.0))))


def _layer_norm(v, g, b, eps=1e-7):
    # The PyTorch module constructs nn.LayerNorm(dim, eps=1e-07) explicitly.
    mu = jnp.mean(v, axis=-1, keepdims=True)
    var = jnp.mean(jnp.square(v - mu), axis=-1, keepdims=True)
    return (v - mu) / jnp.sqrt(var + eps) * g + b


# ----------------------------------------------------------------------------
# Fused transformer trunk: depth x Block + final LayerNorm
# grid = (batch [parallel], depth [arbitrary]); tokens resident across depth.
# ----------------------------------------------------------------------------
def fused_vit_kernel(tok0_ref, g1_ref, b1_ref, wqkv_ref, wproj_ref, bproj_ref,
                     g2_ref, b2_ref, w1_ref, bb1_ref, w2_ref, bb2_ref,
                     ng_ref, nb_ref, o_ref, *, n_heads):
    d = pl.program_id(1)

    # --- first depth step: load the (already embedded) tokens for this image ---
    @pl.when(d == 0)
    def _():
        o_ref[...] = tok0_ref[...]        # PatchEmbed + pos add hoisted to wrapper

    x = o_ref[...]                        # (P, D) f32, resident across depth steps
    P, D = x.shape
    H = n_heads
    hd = D // H

    # ---- Attention (pre-LN); 1/sqrt(hd) already folded into wqkv q-columns ----
    h1 = _layer_norm(x, g1_ref[...], b1_ref[...])
    qkv = jnp.dot(h1.astype(BF16), wqkv_ref[...], preferred_element_type=jnp.float32)
    q = qkv[:, 0 * D:1 * D].reshape(P, H, hd)
    k = qkv[:, 1 * D:2 * D].reshape(P, H, hd)
    v = qkv[:, 2 * D:3 * D].reshape(P, H, hd)
    qh = jnp.swapaxes(q, 0, 1)            # (H, P, hd)
    kh = jnp.swapaxes(k, 0, 1)
    vh = jnp.swapaxes(v, 0, 1)

    # TODO(synk): hd (=D/H) < 128/256 under-fills the MXU contraction on v6e/v7x;
    # only a model-level change (fewer/wider heads) can recover that utilization.
    s = jnp.einsum('hqd,hkd->hqk', qh.astype(BF16), kh.astype(BF16),
                   preferred_element_type=jnp.float32)          # (H, P, P)
    s = s - jnp.max(s, axis=-1, keepdims=True)
    e = jnp.exp(s)
    a = e * pl.reciprocal(jnp.sum(e, axis=-1, keepdims=True), approx=True)
    o = jnp.einsum('hqk,hkd->hqd', a.astype(BF16), vh.astype(BF16),
                   preferred_element_type=jnp.float32)          # (H, P, hd)
    o = jnp.swapaxes(o, 0, 1).reshape(P, D)
    x = x + (jnp.dot(o.astype(BF16), wproj_ref[...],
                     preferred_element_type=jnp.float32) + bproj_ref[...])

    # ---- MLP (pre-LN), GELU in f32 ----
    h2 = _layer_norm(x, g2_ref[...], b2_ref[...])
    m = jnp.dot(h2.astype(BF16), w1_ref[...], preferred_element_type=jnp.float32) + bb1_ref[...]
    m = _gelu(m)
    m = jnp.dot(m.astype(BF16), w2_ref[...], preferred_element_type=jnp.float32) + bb2_ref[...]
    o_ref[...] = x + m                    # drop_path / dropout: identity (eval)

    # --- last depth step: final LayerNorm ---
    @pl.when(d == pl.num_programs(1) - 1)
    def _():
        o_ref[...] = _layer_norm(o_ref[...], ng_ref[...], nb_ref[...])


def pallas_vit_trunk(tok0, prm, *, n_heads):
    B, P, D = tok0.shape
    depth = prm["wqkv"].shape[0]

    def perdepth(a):  # (depth, X, Y) -> block (X, Y) selected by the depth grid index
        return pl.BlockSpec((None,) + a.shape[1:], lambda b, d: (d, 0, 0))

    def const2(a):    # full 2-D block, constant across the grid
        return pl.BlockSpec(a.shape, lambda b, d: (0, 0))

    # TODO(synk): at production ViT sizes add an inner "arbitrary" N-tiling axis
    # over the MLP hidden dim (split w1 by columns / w2 by rows) so per-step
    # weight blocks stay a few MiB within v7x's 64 MiB VMEM.
    return pl.pallas_call(
        partial(fused_vit_kernel, n_heads=n_heads),
        out_shape=jax.ShapeDtypeStruct((B, P, D), jnp.float32),
        grid=(B, depth),
        in_specs=[
            pl.BlockSpec((None, P, D), lambda b, d: (b, 0, 0)),   # tokens, per image
            perdepth(prm["ln1_g"]), perdepth(prm["ln1_b"]),
            perdepth(prm["wqkv"]), perdepth(prm["wproj"]), perdepth(prm["bproj"]),
            perdepth(prm["ln2_g"]), perdepth(prm["ln2_b"]),
            perdepth(prm["w1"]), perdepth(prm["b1"]),
            perdepth(prm["w2"]), perdepth(prm["b2"]),
            const2(prm["norm_g"]), const2(prm["norm_b"]),
        ],
        out_specs=pl.BlockSpec((None, P, D), lambda b, d: (b, 0, 0)),  # resident tokens
        compiler_params=pltpu.CompilerParams(
            dimension_semantics=("parallel", "arbitrary"),
            vmem_limit_bytes=TRUNK_VMEM_LIMIT),
    )(tok0,
      prm["ln1_g"], prm["ln1_b"], prm["wqkv"], prm["wproj"], prm["bproj"],
      prm["ln2_g"], prm["ln2_b"], prm["w1"], prm["b1"], prm["w2"], prm["b2"],
      prm["norm_g"], prm["norm_b"])


# ----------------------------------------------------------------------------
# RecTracHead3: ConvTranspose2d(k=3, s=2, p=1, op=1) as ONE fused phase matmul
# ----------------------------------------------------------------------------
def convt_phase_kernel(x_ref, w_ref, b_ref, o_ref, *, act, H, W, cp):
    # x_ref: (H+1, W+1, Cin) zero-padded NHWC input for one image (batch squeezed).
    Cin = x_ref.shape[-1]
    x = x_ref[0:H, 0:W, :].reshape(H * W, Cin)              # x[m,   n  ]
    x_r = x_ref[0:H, 1:W + 1, :].reshape(H * W, Cin)        # x[m,   n+1]
    x_d = x_ref[1:H + 1, 0:W, :].reshape(H * W, Cin)        # x[m+1, n  ]
    x_dr = x_ref[1:H + 1, 1:W + 1, :].reshape(H * W, Cin)   # x[m+1, n+1]
    # Concatenate the 4 shifted views along K -> a single full-depth MXU matmul.
    xcat = jnp.concatenate([x, x_r, x_d, x_dr], axis=-1).astype(BF16)   # (H*W, 4*Cin)

    # Output columns are 4 lane-dense phase blocks [ee | eo | oe | oo], cp wide each.
    y = jnp.dot(xcat, w_ref[...], preferred_element_type=jnp.float32) + b_ref[...]
    if act == "gelu":
        y = _gelu(y)
    elif act == "softplus_ch2":
        # Softplus only on (per-phase) channels >= 2; padded channels are discarded.
        ch = jax.lax.broadcasted_iota(jnp.int32, y.shape, 1) % cp
        y = jnp.where(ch >= 2, _softplus(y), y)
    o_ref[...] = y.astype(o_ref.dtype)


def conv_transpose_stage(x_nhwc, sp, act, cout, out_dtype):
    B, H, W, Cin = x_nhwc.shape
    cp = _phase_cp(cout)
    xp = jnp.pad(x_nhwc, ((0, 0), (0, 1), (0, 1), (0, 0)))      # boundary zeros
    out = pl.pallas_call(
        partial(convt_phase_kernel, act=act, H=H, W=W, cp=cp),
        out_shape=jax.ShapeDtypeStruct((B, H * W, 4 * cp), out_dtype),
        grid=(B,),
        in_specs=[
            pl.BlockSpec((None, H + 1, W + 1, Cin), lambda i: (i, 0, 0, 0)),
            pl.BlockSpec(sp["w"].shape, lambda i: (0, 0)),
            pl.BlockSpec(sp["bias"].shape, lambda i: (0, 0)),
        ],
        out_specs=pl.BlockSpec((None, H * W, 4 * cp), lambda i: (i, 0, 0)),
        compiler_params=pltpu.CompilerParams(dimension_semantics=("parallel",)),
    )(xp, sp["w"], sp["bias"])
    # Interleave phases back to spatial NHWC: y[2m+pi, 2n+pj] = phase[pi,pj][m, n].
    y = out.reshape(B, H, W, 2, 2, cp)[..., :cout]
    y = y.transpose(0, 1, 3, 2, 4, 5).reshape(B, 2 * H, 2 * W, cout)
    return y


def _make_convt_stage_params(w, b):
    """Phase-split a torch ConvTranspose2d weight (Cin, Cout, 3, 3) into ONE
    (4*Cin, 4*cp) lane-dense matmul matrix (K blocks = [x | x_r | x_d | x_dr],
    N blocks = phases [ee | eo | oe | oo]) plus a tiled padded bias."""
    Cin, Cout = w.shape[0], w.shape[1]
    cp = _phase_cp(Cout)
    tap = lambda kh, kw: jnp.pad(w[:, :, kh, kw], ((0, 0), (0, cp - Cout)))
    z = jnp.zeros((Cin, cp), jnp.float32)
    wx = jnp.concatenate([tap(1, 1), tap(1, 2), tap(2, 1), tap(2, 2)], axis=1)   # x[m, n]
    wr = jnp.concatenate([z, tap(1, 0), z, tap(2, 0)], axis=1)                    # x[m, n+1]
    wd = jnp.concatenate([z, z, tap(0, 1), tap(0, 2)], axis=1)                    # x[m+1, n]
    wdr = jnp.concatenate([z, z, z, tap(0, 0)], axis=1)                           # x[m+1, n+1]
    wcat = jnp.concatenate([wx, wr, wd, wdr], axis=0)                             # (4*Cin, 4*cp)
    bias = jnp.tile(jnp.pad(b, (0, cp - Cout)), 4).reshape(1, 4 * cp)
    return {"w": wcat.astype(BF16), "bias": bias}


# ----------------------------------------------------------------------------
# Full VisionTransformer3 forward (eval mode)
# ----------------------------------------------------------------------------
@partial(jax.jit, static_argnames=("patch_size", "n_heads"))
def vit_forward(x, params, *, patch_size, n_heads):
    B, Cin, S, _ = x.shape
    g = S // patch_size
    P = g * g
    D = params["pe_w"].shape[1]

    # PatchEmbed: non-overlapping im2col (layout glue) + a one-off XLA dot,
    # hoisted out of the fused trunk kernel per the VMEM review.
    p = x.reshape(B, Cin, g, patch_size, g, patch_size)
    p = p.transpose(0, 2, 4, 1, 3, 5).reshape(B, P, Cin * patch_size * patch_size)
    tok0 = jnp.einsum('bpk,kd->bpd', p, params["pe_w"]) + params["pe_b"] + params["pos"]
    # pos_drop: identity (eval)

    tok = pallas_vit_trunk(tok0, params, n_heads=n_heads)       # (B, P, D) f32

    # RecTracHead3: NHWC throughout; intermediate stage outputs are bf16.
    y = tok.astype(BF16).reshape(B, g, g, D)
    dtypes = (BF16, BF16, jnp.float32)
    for sp, act, cout, dt in zip(params["head"], HEAD_ACTS, HEAD_COUT, dtypes):
        y = conv_transpose_stage(y, sp, act, cout, dt)
    return y.transpose(0, 3, 1, 2)       # (B, 4, 8*g, 8*g) NCHW

    # TODO(synk): return_attention path (per-block attention maps) is not implemented.


# ----------------------------------------------------------------------------
# Deterministic synthetic parameter init (kernel-ready layouts)
# ----------------------------------------------------------------------------
def init_params(key, *, n_patches, patch_size, embed_dim, depth, n_heads, mlp_ratio):
    Dh = int(embed_dim * mlp_ratio)
    Kp = 2 * patch_size * patch_size
    scale = float(embed_dim // n_heads) ** (-0.5)
    ks = iter(jax.random.split(key, 6 + 4 * depth))
    nrm = lambda k, shape, s=0.02: s * jax.random.normal(k, shape, jnp.float32)

    # PatchEmbed torch Conv2d weight (D, 2, ps, ps) -> matmul matrix (Kp, D), f32 (hoisted dot).
    pe_conv_w = nrm(next(ks), (embed_dim, 2, patch_size, patch_size))
    pe_w = pe_conv_w.transpose(1, 2, 3, 0).reshape(Kp, embed_dim)

    params = {
        "pe_w": pe_w,
        "pe_b": nrm(next(ks), (1, embed_dim)),
        # torch inits pos_embed to zeros; small noise makes the add non-trivial.
        "pos": nrm(next(ks), (n_patches, embed_dim)),
    }

    wqkv, wproj, w1, w2 = [], [], [], []
    for _ in range(depth):
        wq = nrm(next(ks), (embed_dim, 3 * embed_dim))           # qkv_bias=False
        wq = wq.at[:, :embed_dim].multiply(scale)                # fold 1/sqrt(hd) into q cols
        wqkv.append(wq)
        wproj.append(nrm(next(ks), (embed_dim, embed_dim)))
        w1.append(nrm(next(ks), (embed_dim, Dh)))
        w2.append(nrm(next(ks), (Dh, embed_dim)))
    params.update({
        "ln1_g": jnp.ones((depth, 1, embed_dim), jnp.float32),
        "ln1_b": jnp.zeros((depth, 1, embed_dim), jnp.float32),
        "wqkv": jnp.stack(wqkv).astype(BF16),
        "wproj": jnp.stack(wproj).astype(BF16),
        "bproj": jnp.zeros((depth, 1, embed_dim), jnp.float32),
        "ln2_g": jnp.ones((depth, 1, embed_dim), jnp.float32),
        "ln2_b": jnp.zeros((depth, 1, embed_dim), jnp.float32),
        "w1": jnp.stack(w1).astype(BF16),
        "b1": jnp.zeros((depth, 1, Dh), jnp.float32),
        "w2": jnp.stack(w2).astype(BF16),
        "b2": jnp.zeros((depth, 1, embed_dim), jnp.float32),
        "norm_g": jnp.ones((1, embed_dim), jnp.float32),
        "norm_b": jnp.zeros((1, embed_dim), jnp.float32),
    })

    # RecTracHead3 conv-transpose weights (torch layout (Cin, Cout, 3, 3)).
    head = []
    chans = [embed_dim] + list(HEAD_COUT)
    for i in range(3):
        w = nrm(next(ks), (chans[i], chans[i + 1], 3, 3))
        b = jnp.zeros((chans[i + 1],), jnp.float32)
        head.append(_make_convt_stage_params(w, b))
    params["head"] = head
    return params


if __name__ == "__main__":
    # Small-but-consistent config: dspl=16, patch=8 -> 2x2 grid of patches,
    # embed_dim=32, depth=2, n_heads=4, mlp_ratio=4.0, qkv_bias=False, eval mode.
    B, DSPL, PATCH, EMBED, DEPTH, HEADS, MLP_RATIO = 2, 16, 8, 32, 2, 4, 4.0
    n_patches = (DSPL // PATCH) ** 2

    key = jax.random.PRNGKey(0)
    k_params, k_x = jax.random.split(key)
    params = init_params(k_params, n_patches=n_patches, patch_size=PATCH,
                         embed_dim=EMBED, depth=DEPTH, n_heads=HEADS,
                         mlp_ratio=MLP_RATIO)

    x = jax.random.normal(k_x, (B, 2, DSPL, DSPL), jnp.float32)  # NCHW, like torch

    out = vit_forward(x, params, patch_size=PATCH, n_heads=HEADS)
    out = jax.block_until_ready(out)

    assert out.shape == (B, 4, DSPL, DSPL), out.shape
    assert bool(jnp.all(out[:, 2:] >= 0.0))      # softplus channels non-negative
    assert bool(jnp.all(jnp.isfinite(out)))
    # TODO(synk): dropout / drop_path are eval-mode identities (p>0 only matters in training).
    print("KERNEL_OK")
</pallas_src>

<mosaic_0001>
module attributes {stable_mosaic.version = 11 : i64} {
  func.func @fused_vit_kernel(%arg0: i32, %arg1: i32, %arg2: memref<1x4x32xf32, #tpu.memory_space<vmem>>, %arg3: memref<1x1x32xf32, #tpu.memory_space<vmem>>, %arg4: memref<1x1x32xf32, #tpu.memory_space<vmem>>, %arg5: memref<1x32x96xbf16, #tpu.memory_space<vmem>>, %arg6: memref<1x32x32xbf16, #tpu.memory_space<vmem>>, %arg7: memref<1x1x32xf32, #tpu.memory_space<vmem>>, %arg8: memref<1x1x32xf32, #tpu.memory_space<vmem>>, %arg9: memref<1x1x32xf32, #tpu.memory_space<vmem>>, %arg10: memref<1x32x128xbf16, #tpu.memory_space<vmem>>, %arg11: memref<1x1x128xf32, #tpu.memory_space<vmem>>, %arg12: memref<1x128x32xbf16, #tpu.memory_space<vmem>>, %arg13: memref<1x1x32xf32, #tpu.memory_space<vmem>>, %arg14: memref<1x32xf32, #tpu.memory_space<vmem>>, %arg15: memref<1x32xf32, #tpu.memory_space<vmem>>, %arg16: memref<1x4x32xf32, #tpu.memory_space<vmem>>) attributes {dimension_semantics = [#tpu.dimension_semantics<parallel>, #tpu.dimension_semantics<arbitrary>], iteration_bounds = array<i64: 2, 2>, scalar_prefetch = 0 : i64, scratch_operands = 0 : i64, tpu.core_type = #tpu.core_type<tc>, window_params = [{transform_indices = @transform_0, window_bounds = array<i64: 1, 4, 32>}, {transform_indices = @transform_1, window_bounds = array<i64: 1, 1, 32>}, {transform_indices = @transform_2, window_bounds = array<i64: 1, 1, 32>}, {transform_indices = @transform_3, window_bounds = array<i64: 1, 32, 96>}, {transform_indices = @transform_4, window_bounds = array<i64: 1, 32, 32>}, {transform_indices = @transform_5, window_bounds = array<i64: 1, 1, 32>}, {transform_indices = @transform_6, window_bounds = array<i64: 1, 1, 32>}, {transform_indices = @transform_7, window_bounds = array<i64: 1, 1, 32>}, {transform_indices = @transform_8, window_bounds = array<i64: 1, 32, 128>}, {transform_indices = @transform_9, window_bounds = array<i64: 1, 1, 128>}, {transform_indices = @transform_10, window_bounds = array<i64: 1, 128, 32>}, {transform_indices = @transform_11, window_bounds = array<i64: 1, 1, 32>}, {pipeline_mode = #tpu.pipeline_mode<synchronous>, transform_indices = @transform_12, window_bounds = array<i64: 1, 32>}, {pipeline_mode = #tpu.pipeline_mode<synchronous>, transform_indices = @transform_13, window_bounds = array<i64: 1, 32>}, {transform_indices = @transform_14, window_bounds = array<i64: 1, 4, 32>}]} {
    %c0_i32 = arith.constant 0 : i32
    %0 = arith.cmpi eq, %arg1, %c0_i32 : i32
    %1 = arith.extui %0 : i1 to i32
    %c0_i32_0 = arith.constant 0 : i32
    %2 = arith.cmpi ne, %1, %c0_i32_0 : i32
    scf.if %2 {
      %c0_61 = arith.constant 0 : index
      %c0_62 = arith.constant 0 : index
      %c0_63 = arith.constant 0 : index
      %133 = vector.load %arg2[%c0_61, %c0_62, %c0_63] : memref<1x4x32xf32, #tpu.memory_space<vmem>>, vector<1x4x32xf32>
      %134 = vector.shape_cast %133 : vector<1x4x32xf32> to vector<4x32xf32>
      %c0_64 = arith.constant 0 : index
      %c0_65 = arith.constant 0 : index
      %c0_66 = arith.constant 0 : index
      %135 = vector.load %arg16[%c0_64, %c0_65, %c0_66] : memref<1x4x32xf32, #tpu.memory_space<vmem>>, vector<1x4x32xf32>
      %136 = vector.shape_cast %135 : vector<1x4x32xf32> to vector<4x32xf32>
      %137 = vector.shape_cast %134 : vector<4x32xf32> to vector<1x4x32xf32>
      tpu.vector_store %arg16[%c0_64, %c0_65, %c0_66], %137 {strides = array<i32>} : memref<1x4x32xf32, #tpu.memory_space<vmem>>, vector<1x4x32xf32>,
    } else {
    }
    %c0 = arith.constant 0 : index
    %c0_1 = arith.constant 0 : index
    %c0_2 = arith.constant 0 : index
    %3 = vector.load %arg16[%c0, %c0_1, %c0_2] : memref<1x4x32xf32, #tpu.memory_space<vmem>>, vector<1x4x32xf32>
    %4 = vector.shape_cast %3 : vector<1x4x32xf32> to vector<4x32xf32>
    %c0_3 = arith.constant 0 : index
    %c0_4 = arith.constant 0 : index
    %c0_5 = arith.constant 0 : index
    %5 = vector.load %arg3[%c0_3, %c0_4, %c0_5] : memref<1x1x32xf32, #tpu.memory_space<vmem>>, vector<1x1x32xf32>
    %6 = vector.shape_cast %5 : vector<1x1x32xf32> to vector<1x32xf32>
    %c0_6 = arith.constant 0 : index
    %c0_7 = arith.constant 0 : index
    %c0_8 = arith.constant 0 : index
    %7 = vector.load %arg4[%c0_6, %c0_7, %c0_8] : memref<1x1x32xf32, #tpu.memory_space<vmem>>, vector<1x1x32xf32>
    %8 = vector.shape_cast %7 : vector<1x1x32xf32> to vector<1x32xf32>
    %cst = arith.constant dense<0.000000e+00> : vector<4xf32>
    %9 = vector.multi_reduction <add>, %4, %cst [1] : vector<4x32xf32> to vector<4xf32>
    %10 = vector.shape_cast %9 : vector<4xf32> to vector<4x1xf32>
    %cst_9 = arith.constant 3.200000e+01 : f32
    %11 = vector.broadcast %cst_9 : f32 to vector<4x1xf32>
    %12 = arith.divf %10, %11 : vector<4x1xf32>
    %13 = vector.broadcast %12 : vector<4x1xf32> to vector<4x32xf32>
    %14 = arith.subf %4, %13 : vector<4x32xf32>
    %15 = arith.mulf %14, %14 : vector<4x32xf32>
    %cst_10 = arith.constant dense<0.000000e+00> : vector<4xf32>
    %16 = vector.multi_reduction <add>, %15, %cst_10 [1] : vector<4x32xf32> to vector<4xf32>
    %17 = vector.shape_cast %16 : vector<4xf32> to vector<4x1xf32>
    %cst_11 = arith.constant 3.200000e+01 : f32
    %18 = vector.broadcast %cst_11 : f32 to vector<4x1xf32>
    %19 = arith.divf %17, %18 : vector<4x1xf32>
    %20 = vector.broadcast %12 : vector<4x1xf32> to vector<4x32xf32>
    %21 = arith.subf %4, %20 : vector<4x32xf32>
    %cst_12 = arith.constant 1.000000e-07 : f32
    %22 = vector.broadcast %cst_12 : f32 to vector<4x1xf32>
    %23 = arith.addf %19, %22 : vector<4x1xf32>
    %24 = math.sqrt %23 : vector<4x1xf32>
    %25 = vector.broadcast %24 : vector<4x1xf32> to vector<4x32xf32>
    %26 = arith.divf %21, %25 : vector<4x32xf32>
    %27 = vector.broadcast %6 : vector<1x32xf32> to vector<4x32xf32>
    %28 = arith.mulf %26, %27 : vector<4x32xf32>
    %29 = vector.broadcast %8 : vector<1x32xf32> to vector<4x32xf32>
    %30 = arith.addf %28, %29 : vector<4x32xf32>
    %31 = arith.truncf %30 : vector<4x32xf32> to vector<4x32xbf16>
    %c0_13 = arith.constant 0 : index
    %c0_14 = arith.constant 0 : index
    %c0_15 = arith.constant 0 : index
    %32 = vector.load %arg5[%c0_13, %c0_14, %c0_15] : memref<1x32x96xbf16, #tpu.memory_space<vmem>>, vector<1x32x96xbf16>
    %33 = vector.shape_cast %32 : vector<1x32x96xbf16> to vector<32x96xbf16>
    %cst_16 = arith.constant dense<0.000000e+00> : vector<4x96xf32>
    %34 = tpu.matmul %31, %33, %cst_16 {dimension_numbers = #tpu.dot_dimension_numbers<[1], [0], [0], [1], [0, 0, 1, 1], [], []>} : vector<4x32xbf16>, vector<32x96xbf16>, vector<4x96xf32> -> vector<4x96xf32>
    %35 = vector.extract_strided_slice %34 {offsets = [0, 0], sizes = [4, 32], strides = [1, 1]} : vector<4x96xf32> to vector<4x32xf32>
    %36 = vector.shape_cast %35 : vector<4x32xf32> to vector<4x4x8xf32>
    %37 = vector.extract_strided_slice %34 {offsets = [0, 32], sizes = [4, 32], strides = [1, 1]} : vector<4x96xf32> to vector<4x32xf32>
    %38 = vector.shape_cast %37 : vector<4x32xf32> to vector<4x4x8xf32>
    %39 = vector.extract_strided_slice %34 {offsets = [0, 64], sizes = [4, 32], strides = [1, 1]} : vector<4x96xf32> to vector<4x32xf32>
    %40 = vector.shape_cast %39 : vector<4x32xf32> to vector<4x4x8xf32>
    %41 = tpu.transpose %36, [1, 0, 2] : vector<4x4x8xf32> -> vector<4x4x8xf32>
    %42 = tpu.transpose %38, [1, 0, 2] : vector<4x4x8xf32> -> vector<4x4x8xf32>
    %43 = tpu.transpose %40, [1, 0, 2] : vector<4x4x8xf32> -> vector<4x4x8xf32>
    %44 = arith.truncf %41 : vector<4x4x8xf32> to vector<4x4x8xbf16>
    %45 = arith.truncf %42 : vector<4x4x8xf32> to vector<4x4x8xbf16>
    "tpu.trace_start"() <{level = 10 : i32, message = "hqd,hkd->hqk"}> : () -> ()
    %cst_17 = arith.constant dense<0.000000e+00> : vector<4x4x4xf32>
    %46 = tpu.matmul %44, %45, %cst_17 {dimension_numbers = #tpu.dot_dimension_numbers<[2], [2], [1], [1], [0, 0, 0, 1, 1, 1], [0], [0]>} : vector<4x4x8xbf16>, vector<4x4x8xbf16>, vector<4x4x4xf32> -> vector<4x4x4xf32>
    "tpu.trace_stop"() : () -> ()
    %cst_18 = arith.constant dense<0xFF800000> : vector<4x4xf32>
    %47 = vector.multi_reduction <maximumf>, %46, %cst_18 [2] : vector<4x4x4xf32> to vector<4x4xf32>
    %48 = vector.shape_cast %47 : vector<4x4xf32> to vector<4x4x1xf32>
    %49 = vector.broadcast %48 : vector<4x4x1xf32> to vector<4x4x4xf32>
    %50 = arith.subf %46, %49 : vector<4x4x4xf32>
    %51 = math.exp %50 : vector<4x4x4xf32>
    %cst_19 = arith.constant dense<0.000000e+00> : vector<4x4xf32>
    %52 = vector.multi_reduction <add>, %51, %cst_19 [2] : vector<4x4x4xf32> to vector<4x4xf32>
    %53 = vector.shape_cast %52 : vector<4x4xf32> to vector<4x4x1xf32>
    %54 = tpu.reciprocal %53 {approx = true} : vector<4x4x1xf32> -> vector<4x4x1xf32>
    %55 = vector.broadcast %54 : vector<4x4x1xf32> to vector<4x4x4xf32>
    %56 = arith.mulf %51, %55 : vector<4x4x4xf32>
    %57 = arith.truncf %56 : vector<4x4x4xf32> to vector<4x4x4xbf16>
    %58 = arith.truncf %43 : vector<4x4x8xf32> to vector<4x4x8xbf16>
    "tpu.trace_start"() <{level = 10 : i32, message = "hqk,hkd->hqd"}> : () -> ()
    %cst_20 = arith.constant dense<0.000000e+00> : vector<4x4x8xf32>
    %59 = tpu.matmul %57, %58, %cst_20 {dimension_numbers = #tpu.dot_dimension_numbers<[2], [1], [1], [2], [0, 0, 0, 1, 1, 2], [0], [0]>} : vector<4x4x4xbf16>, vector<4x4x8xbf16>, vector<4x4x8xf32> -> vector<4x4x8xf32>
    "tpu.trace_stop"() : () -> ()
    %60 = tpu.transpose %59, [1, 0, 2] : vector<4x4x8xf32> -> vector<4x4x8xf32>
    %61 = vector.shape_cast %60 : vector<4x4x8xf32> to vector<4x32xf32>
    %62 = arith.truncf %61 : vector<4x32xf32> to vector<4x32xbf16>
    %c0_21 = arith.constant 0 : index
    %c0_22 = arith.constant 0 : index
    %c0_23 = arith.constant 0 : index
    %63 = vector.load %arg6[%c0_21, %c0_22, %c0_23] : memref<1x32x32xbf16, #tpu.memory_space<vmem>>, vector<1x32x32xbf16>
    %64 = vector.shape_cast %63 : vector<1x32x32xbf16> to vector<32x32xbf16>
    %cst_24 = arith.constant dense<0.000000e+00> : vector<4x32xf32>
    %65 = tpu.matmul %62, %64, %cst_24 {dimension_numbers = #tpu.dot_dimension_numbers<[1], [0], [0], [1], [0, 0, 1, 1], [], []>} : vector<4x32xbf16>, vector<32x32xbf16>, vector<4x32xf32> -> vector<4x32xf32>
    %c0_25 = arith.constant 0 : index
    %c0_26 = arith.constant 0 : index
    %c0_27 = arith.constant 0 : index
    %66 = vector.load %arg7[%c0_25, %c0_26, %c0_27] : memref<1x1x32xf32, #tpu.memory_space<vmem>>, vector<1x1x32xf32>
    %67 = vector.shape_cast %66 : vector<1x1x32xf32> to vector<1x32xf32>
    %68 = vector.broadcast %67 : vector<1x32xf32> to vector<4x32xf32>
    %69 = arith.addf %65, %68 : vector<4x32xf32>
    %70 = arith.addf %4, %69 : vector<4x32xf32>
    %c0_28 = arith.constant 0 : index
    %c0_29 = arith.constant 0 : index
    %c0_30 = arith.constant 0 : index
    %71 = vector.load %arg8[%c0_28, %c0_29, %c0_30] : memref<1x1x32xf32, #tpu.memory_space<vmem>>, vector<1x1x32xf32>
    %72 = vector.shape_cast %71 : vector<1x1x32xf32> to vector<1x32xf32>
    %c0_31 = arith.constant 0 : index
    %c0_32 = arith.constant 0 : index
    %c0_33 = arith.constant 0 : index
    %73 = vector.load %arg9[%c0_31, %c0_32, %c0_33] : memref<1x1x32xf32, #tpu.memory_space<vmem>>, vector<1x1x32xf32>
    %74 = vector.shape_cast %73 : vector<1x1x32xf32> to vector<1x32xf32>
    %cst_34 = arith.constant dense<0.000000e+00> : vector<4xf32>
    %75 = vector.multi_reduction <add>, %70, %cst_34 [1] : vector<4x32xf32> to vector<4xf32>
    %76 = vector.shape_cast %75 : vector<4xf32> to vector<4x1xf32>
    %cst_35 = arith.constant 3.200000e+01 : f32
    %77 = vector.broadcast %cst_35 : f32 to vector<4x1xf32>
    %78 = arith.divf %76, %77 : vector<4x1xf32>
    %79 = vector.broadcast %78 : vector<4x1xf32> to vector<4x32xf32>
    %80 = arith.subf %70, %79 : vector<4x32xf32>
    %81 = arith.mulf %80, %80 : vector<4x32xf32>
    %cst_36 = arith.constant dense<0.000000e+00> : vector<4xf32>
    %82 = vector.multi_reduction <add>, %81, %cst_36 [1] : vector<4x32xf32> to vector<4xf32>
    %83 = vector.shape_cast %82 : vector<4xf32> to vector<4x1xf32>
    %cst_37 = arith.constant 3.200000e+01 : f32
    %84 = vector.broadcast %cst_37 : f32 to vector<4x1xf32>
    %85 = arith.divf %83, %84 : vector<4x1xf32>
    %86 = vector.broadcast %78 : vector<4x1xf32> to vector<4x32xf32>
    %87 = arith.subf %70, %86 : vector<4x32xf32>
    %cst_38 = arith.constant 1.000000e-07 : f32
    %88 = vector.broadcast %cst_38 : f32 to vector<4x1xf32>
    %89 = arith.addf %85, %88 : vector<4x1xf32>
    %90 = math.sqrt %89 : vector<4x1xf32>
    %91 = vector.broadcast %90 : vector<4x1xf32> to vector<4x32xf32>
    %92 = arith.divf %87, %91 : vector<4x32xf32>
    %93 = vector.broadcast %72 : vector<1x32xf32> to vector<4x32xf32>
    %94 = arith.mulf %92, %93 : vector<4x32xf32>
    %95 = vector.broadcast %74 : vector<1x32xf32> to vector<4x32xf32>
    %96 = arith.addf %94, %95 : vector<4x32xf32>
    %97 = arith.truncf %96 : vector<4x32xf32> to vector<4x32xbf16>
    %c0_39 = arith.constant 0 : index
    %c0_40 = arith.constant 0 : index
    %c0_41 = arith.constant 0 : index
    %98 = vector.load %arg10[%c0_39, %c0_40, %c0_41] : memref<1x32x128xbf16, #tpu.memory_space<vmem>>, vector<1x32x128xbf16>
    %99 = vector.shape_cast %98 : vector<1x32x128xbf16> to vector<32x128xbf16>
    %cst_42 = arith.constant dense<0.000000e+00> : vector<4x128xf32>
    %100 = tpu.matmul %97, %99, %cst_42 {dimension_numbers = #tpu.dot_dimension_numbers<[1], [0], [0], [1], [0, 0, 1, 1], [], []>} : vector<4x32xbf16>, vector<32x128xbf16>, vector<4x128xf32> -> vector<4x128xf32>
    %c0_43 = arith.constant 0 : index
    %c0_44 = arith.constant 0 : index
    %c0_45 = arith.constant 0 : index
    %101 = vector.load %arg11[%c0_43, %c0_44, %c0_45] : memref<1x1x128xf32, #tpu.memory_space<vmem>>, vector<1x1x128xf32>
    %102 = vector.shape_cast %101 : vector<1x1x128xf32> to vector<1x128xf32>
    %103 = vector.broadcast %102 : vector<1x128xf32> to vector<4x128xf32>
    %104 = arith.addf %100, %103 : vector<4x128xf32>
    %cst_46 = arith.constant 5.000000e-01 : f32
    %105 = vector.broadcast %cst_46 : f32 to vector<4x128xf32>
    %106 = arith.mulf %105, %104 : vector<4x128xf32>
    %cst_47 = arith.constant 4.471500e-02 : f32
    %107 = vector.broadcast %cst_47 : f32 to vector<4x128xf32>
    %108 = arith.mulf %107, %104 : vector<4x128xf32>
    %109 = arith.mulf %108, %104 : vector<4x128xf32>
    %110 = arith.mulf %109, %104 : vector<4x128xf32>
    %111 = arith.addf %104, %110 : vector<4x128xf32>
    %cst_48 = arith.constant 0.797884583 : f32
    %112 = vector.broadcast %cst_48 : f32 to vector<4x128xf32>
    %113 = arith.mulf %112, %111 : vector<4x128xf32>
    %114 = math.tanh %113 : vector<4x128xf32>
    %cst_49 = arith.constant 1.000000e+00 : f32
    %115 = vector.broadcast %cst_49 : f32 to vector<4x128xf32>
    %116 = arith.addf %115, %114 : vector<4x128xf32>
    %117 = arith.mulf %106, %116 : vector<4x128xf32>
    %118 = arith.truncf %117 : vector<4x128xf32> to vector<4x128xbf16>
    %c0_50 = arith.constant 0 : index
    %c0_51 = arith.constant 0 : index
    %c0_52 = arith.constant 0 : index
    %119 = vector.load %arg12[%c0_50, %c0_51, %c0_52] : memref<1x128x32xbf16, #tpu.memory_space<vmem>>, vector<1x128x32xbf16>
    %120 = vector.shape_cast %119 : vector<1x128x32xbf16> to vector<128x32xbf16>
    %cst_53 = arith.constant dense<0.000000e+00> : vector<4x32xf32>
    %121 = tpu.matmul %118, %120, %cst_53 {dimension_numbers = #tpu.dot_dimension_numbers<[1], [0], [0], [1], [0, 0, 1, 1], [], []>} : vector<4x128xbf16>, vector<128x32xbf16>, vector<4x32xf32> -> vector<4x32xf32>
    %c0_54 = arith.constant 0 : index
    %c0_55 = arith.constant 0 : index
    %c0_56 = arith.constant 0 : index
    %122 = vector.load %arg13[%c0_54, %c0_55, %c0_56] : memref<1x1x32xf32, #tpu.memory_space<vmem>>, vector<1x1x32xf32>
    %123 = vector.shape_cast %122 : vector<1x1x32xf32> to vector<1x32xf32>
    %124 = vector.broadcast %123 : vector<1x32xf32> to vector<4x32xf32>
    %125 = arith.addf %121, %124 : vector<4x32xf32>
    %126 = arith.addf %70, %125 : vector<4x32xf32>
    %c0_57 = arith.constant 0 : index
    %c0_58 = arith.constant 0 : index
    %c0_59 = arith.constant 0 : index
    %127 = vector.load %arg16[%c0_57, %c0_58, %c0_59] : memref<1x4x32xf32, #tpu.memory_space<vmem>>, vector<1x4x32xf32>
    %128 = vector.shape_cast %127 : vector<1x4x32xf32> to vector<4x32xf32>
    %129 = vector.shape_cast %126 : vector<4x32xf32> to vector<1x4x32xf32>
    tpu.vector_store %arg16[%c0_57, %c0_58, %c0_59], %129 {strides = array<i32>} : memref<1x4x32xf32, #tpu.memory_space<vmem>>, vector<1x4x32xf32>,
    %c1_i32 = arith.constant 1 : i32
    %130 = arith.cmpi eq, %arg1, %c1_i32 : i32
    %131 = arith.extui %130 : i1 to i32
    %c0_i32_60 = arith.constant 0 : i32
    %132 = arith.cmpi ne, %131, %c0_i32_60 : i32
    scf.if %132 {
      %c0_61 = arith.constant 0 : index
      %c0_62 = arith.constant 0 : index
      %c0_63 = arith.constant 0 : index
      %133 = vector.load %arg16[%c0_61, %c0_62, %c0_63] : memref<1x4x32xf32, #tpu.memory_space<vmem>>, vector<1x4x32xf32>
      %134 = vector.shape_cast %133 : vector<1x4x32xf32> to vector<4x32xf32>
      %c0_64 = arith.constant 0 : index
      %c0_65 = arith.constant 0 : index
      %135 = vector.load %arg14[%c0_64, %c0_65] : memref<1x32xf32, #tpu.memory_space<vmem>>, vector<1x32xf32>
      %c0_66 = arith.constant 0 : index
      %c0_67 = arith.constant 0 : index
      %136 = vector.load %arg15[%c0_66, %c0_67] : memref<1x32xf32, #tpu.memory_space<vmem>>, vector<1x32xf32>
      %cst_68 = arith.constant dense<0.000000e+00> : vector<4xf32>
      %137 = vector.multi_reduction <add>, %134, %cst_68 [1] : vector<4x32xf32> to vector<4xf32>
      %138 = vector.shape_cast %137 : vector<4xf32> to vector<4x1xf32>
      %cst_69 = arith.constant 3.200000e+01 : f32
      %139 = vector.broadcast %cst_69 : f32 to vector<4x1xf32>
      %140 = arith.divf %138, %139 : vector<4x1xf32>
      %141 = vector.broadcast %140 : vector<4x1xf32> to vector<4x32xf32>
      %142 = arith.subf %134, %141 : vector<4x32xf32>
      %143 = arith.mulf %142, %142 : vector<4x32xf32>
      %cst_70 = arith.constant dense<0.000000e+00> : vector<4xf32>
      %144 = vector.multi_reduction <add>, %143, %cst_70 [1] : vector<4x32xf32> to vector<4xf32>
      %145 = vector.shape_cast %144 : vector<4xf32> to vector<4x1xf32>
      %cst_71 = arith.constant 3.200000e+01 : f32
      %146 = vector.broadcast %cst_71 : f32 to vector<4x1xf32>
      %147 = arith.divf %145, %146 : vector<4x1xf32>
      %148 = vector.broadcast %140 : vector<4x1xf32> to vector<4x32xf32>
      %149 = arith.subf %134, %148 : vector<4x32xf32>
      %cst_72 = arith.constant 1.000000e-07 : f32
      %150 = vector.broadcast %cst_72 : f32 to vector<4x1xf32>
      %151 = arith.addf %147, %150 : vector<4x1xf32>
      %152 = math.sqrt %151 : vector<4x1xf32>
      %153 = vector.broadcast %152 : vector<4x1xf32> to vector<4x32xf32>
      %154 = arith.divf %149, %153 : vector<4x32xf32>
      %155 = vector.broadcast %135 : vector<1x32xf32> to vector<4x32xf32>
      %156 = arith.mulf %154, %155 : vector<4x32xf32>
      %157 = vector.broadcast %136 : vector<1x32xf32> to vector<4x32xf32>
      %158 = arith.addf %156, %157 : vector<4x32xf32>
      %c0_73 = arith.constant 0 : index
      %c0_74 = arith.constant 0 : index
      %c0_75 = arith.constant 0 : index
      %159 = vector.load %arg16[%c0_73, %c0_74, %c0_75] : memref<1x4x32xf32, #tpu.memory_space<vmem>>, vector<1x4x32xf32>
      %160 = vector.shape_cast %159 : vector<1x4x32xf32> to vector<4x32xf32>
      %161 = vector.shape_cast %158 : vector<4x32xf32> to vector<1x4x32xf32>
      tpu.vector_store %arg16[%c0_73, %c0_74, %c0_75], %161 {strides = array<i32>} : memref<1x4x32xf32, #tpu.memory_space<vmem>>, vector<1x4x32xf32>,
    } else {
    }
    return
  }
  func.func @transform_0(%arg0: i32, %arg1: i32) -> (i32, i32, i32) {
    %c0_i32 = arith.constant 0 : i32
    %c0_i32_0 = arith.constant 0 : i32
    %c0_i32_1 = arith.constant 0 : i32
    return %arg0, %c0_i32, %c0_i32_0 : i32, i32, i32
  }
  func.func @transform_1(%arg0: i32, %arg1: i32) -> (i32, i32, i32) {
    %c0_i32 = arith.constant 0 : i32
    %c0_i32_0 = arith.constant 0 : i32
    %c0_i32_1 = arith.constant 0 : i32
    return %arg1, %c0_i32, %c0_i32_0 : i32, i32, i32
  }
  func.func @transform_2(%arg0: i32, %arg1: i32) -> (i32, i32, i32) {
    %c0_i32 = arith.constant 0 : i32
    %c0_i32_0 = arith.constant 0 : i32
    %c0_i32_1 = arith.constant 0 : i32
    return %arg1, %c0_i32, %c0_i32_0 : i32, i32, i32
  }
  func.func @transform_3(%arg0: i32, %arg1: i32) -> (i32, i32, i32) {
    %c0_i32 = arith.constant 0 : i32
    %c0_i32_0 = arith.constant 0 : i32
    %c0_i32_1 = arith.constant 0 : i32
    return %arg1, %c0_i32, %c0_i32_0 : i32, i32, i32
  }
  func.func @transform_4(%arg0: i32, %arg1: i32) -> (i32, i32, i32) {
    %c0_i32 = arith.constant 0 : i32
    %c0_i32_0 = arith.constant 0 : i32
    %c0_i32_1 = arith.constant 0 : i32
    return %arg1, %c0_i32, %c0_i32_0 : i32, i32, i32
  }
  func.func @transform_5(%arg0: i32, %arg1: i32) -> (i32, i32, i32) {
    %c0_i32 = arith.constant 0 : i32
    %c0_i32_0 = arith.constant 0 : i32
    %c0_i32_1 = arith.constant 0 : i32
    return %arg1, %c0_i32, %c0_i32_0 : i32, i32, i32
  }
  func.func @transform_6(%arg0: i32, %arg1: i32) -> (i32, i32, i32) {
    %c0_i32 = arith.constant 0 : i32
    %c0_i32_0 = arith.constant 0 : i32
    %c0_i32_1 = arith.constant 0 : i32
    return %arg1, %c0_i32, %c0_i32_0 : i32, i32, i32
  }
  func.func @transform_7(%arg0: i32, %arg1: i32) -> (i32, i32, i32) {
    %c0_i32 = arith.constant 0 : i32
    %c0_i32_0 = arith.constant 0 : i32
    %c0_i32_1 = arith.constant 0 : i32
    return %arg1, %c0_i32, %c0_i32_0 : i32, i32, i32
  }
  func.func @transform_8(%arg0: i32, %arg1: i32) -> (i32, i32, i32) {
    %c0_i32 = arith.constant 0 : i32
    %c0_i32_0 = arith.constant 0 : i32
    %c0_i32_1 = arith.constant 0 : i32
    return %arg1, %c0_i32, %c0_i32_0 : i32, i32, i32
  }
  func.func @transform_9(%arg0: i32, %arg1: i32) -> (i32, i32, i32) {
    %c0_i32 = arith.constant 0 : i32
    %c0_i32_0 = arith.constant 0 : i32
    %c0_i32_1 = arith.constant 0 : i32
    return %arg1, %c0_i32, %c0_i32_0 : i32, i32, i32
  }
  func.func @transform_10(%arg0: i32, %arg1: i32) -> (i32, i32, i32) {
    %c0_i32 = arith.constant 0 : i32
    %c0_i32_0 = arith.constant 0 : i32
    %c0_i32_1 = arith.constant 0 : i32
    return %arg1, %c0_i32, %c0_i32_0 : i32, i32, i32
  }
  func.func @transform_11(%arg0: i32, %arg1: i32) -> (i32, i32, i32) {
    %c0_i32 = arith.constant 0 : i32
    %c0_i32_0 = arith.constant 0 : i32
    %c0_i32_1 = arith.constant 0 : i32
    return %arg1, %c0_i32, %c0_i32_0 : i32, i32, i32
  }
  func.func @transform_12(%arg0: i32, %arg1: i32) -> (i32, i32) {
    %c0_i32 = arith.constant 0 : i32
    %c0_i32_0 = arith.constant 0 : i32
    %c0_i32_1 = arith.constant 0 : i32
    return %c0_i32, %c0_i32_0 : i32, i32
  }
  func.func @transform_13(%arg0: i32, %arg1: i32) -> (i32, i32) {
    %c0_i32 = arith.constant 0 : i32
    %c0_i32_0 = arith.constant 0 : i32
    %c0_i32_1 = arith.constant 0 : i32
    return %c0_i32, %c0_i32_0 : i32, i32
  }
  func.func @transform_14(%arg0: i32, %arg1: i32) -> (i32, i32, i32) {
    %c0_i32 = arith.constant 0 : i32
    %c0_i32_0 = arith.constant 0 : i32
    %c0_i32_1 = arith.constant 0 : i32
    return %arg0, %c0_i32, %c0_i32_0 : i32, i32, i32
  }
}

module attributes {stable_mosaic.version = 11 : i64} {
  func.func @convt_phase_kernel(%arg0: i32, %arg1: memref<1x3x3x32xbf16, #tpu.memory_space<vmem>>, %arg2: memref<128x256xbf16, #tpu.memory_space<vmem>>, %arg3: memref<1x256xf32, #tpu.memory_space<vmem>>, %arg4: memref<1x4x256xbf16, #tpu.memory_space<vmem>>) attributes {dimension_semantics = [#tpu.dimension_semantics<parallel>], iteration_bounds = array<i64: 2>, scalar_prefetch = 0 : i64, scratch_operands = 0 : i64, tpu.core_type = #tpu.core_type<tc>, window_params = [{transform_indices = @transform_0, window_bounds = array<i64: 1, 3, 3, 32>}, {pipeline_mode = #tpu.pipeline_mode<synchronous>, transform_indices = @transform_1, window_bounds = array<i64: 128, 256>}, {pipeline_mode = #tpu.pipeline_mode<synchronous>, transform_indices = @transform_2, window_bounds = array<i64: 1, 256>}, {transform_indices = @transform_3, window_bounds = array<i64: 1, 4, 256>}]} {
    %c0 = arith.constant 0 : index
    %c0_0 = arith.constant 0 : index
    %c0_1 = arith.constant 0 : index
    %c0_2 = arith.constant 0 : index
    %0 = vector.load %arg1[%c0, %c0_0, %c0_1, %c0_2] : memref<1x3x3x32xbf16, #tpu.memory_space<vmem>>, vector<1x2x2x32xbf16>
    %1 = vector.shape_cast %0 : vector<1x2x2x32xbf16> to vector<2x2x32xbf16>
    %2 = vector.shape_cast %1 : vector<2x2x32xbf16> to vector<4x32xbf16>
    %c0_3 = arith.constant 0 : index
    %c0_4 = arith.constant 0 : index
    %c1 = arith.constant 1 : index
    %c0_5 = arith.constant 0 : index
    %3 = vector.load %arg1[%c0_3, %c0_4, %c1, %c0_5] : memref<1x3x3x32xbf16, #tpu.memory_space<vmem>>, vector<1x2x2x32xbf16>
    %4 = vector.shape_cast %3 : vector<1x2x2x32xbf16> to vector<2x2x32xbf16>
    %5 = vector.shape_cast %4 : vector<2x2x32xbf16> to vector<4x32xbf16>
    %c0_6 = arith.constant 0 : index
    %c1_7 = arith.constant 1 : index
    %c0_8 = arith.constant 0 : index
    %c0_9 = arith.constant 0 : index
    %6 = vector.load %arg1[%c0_6, %c1_7, %c0_8, %c0_9] : memref<1x3x3x32xbf16, #tpu.memory_space<vmem>>, vector<1x2x2x32xbf16>
    %7 = vector.shape_cast %6 : vector<1x2x2x32xbf16> to vector<2x2x32xbf16>
    %8 = vector.shape_cast %7 : vector<2x2x32xbf16> to vector<4x32xbf16>
    %c0_10 = arith.constant 0 : index
    %c1_11 = arith.constant 1 : index
    %c1_12 = arith.constant 1 : index
    %c0_13 = arith.constant 0 : index
    %9 = vector.load %arg1[%c0_10, %c1_11, %c1_12, %c0_13] : memref<1x3x3x32xbf16, #tpu.memory_space<vmem>>, vector<1x2x2x32xbf16>
    %10 = vector.shape_cast %9 : vector<1x2x2x32xbf16> to vector<2x2x32xbf16>
    %11 = vector.shape_cast %10 : vector<2x2x32xbf16> to vector<4x32xbf16>
    %12 = tpu.concatenate %2, %5, %8, %11 in 1 : vector<4x32xbf16>, vector<4x32xbf16>, vector<4x32xbf16>, vector<4x32xbf16> -> vector<4x128xbf16>
    %c0_14 = arith.constant 0 : index
    %c0_15 = arith.constant 0 : index
    %13 = vector.load %arg2[%c0_14, %c0_15] : memref<128x256xbf16, #tpu.memory_space<vmem>>, vector<128x256xbf16>
    %cst = arith.constant dense<0.000000e+00> : vector<4x256xf32>
    %14 = tpu.matmul %12, %13, %cst {dimension_numbers = #tpu.dot_dimension_numbers<[1], [0], [0], [1], [0, 0, 1, 1], [], []>} : vector<4x128xbf16>, vector<128x256xbf16>, vector<4x256xf32> -> vector<4x256xf32>
    %c0_16 = arith.constant 0 : index
    %c0_17 = arith.constant 0 : index
    %15 = vector.load %arg3[%c0_16, %c0_17] : memref<1x256xf32, #tpu.memory_space<vmem>>, vector<1x256xf32>
    %16 = vector.broadcast %15 : vector<1x256xf32> to vector<4x256xf32>
    %17 = arith.addf %14, %16 : vector<4x256xf32>
    %cst_18 = arith.constant 5.000000e-01 : f32
    %18 = vector.broadcast %cst_18 : f32 to vector<4x256xf32>
    %19 = arith.mulf %18, %17 : vector<4x256xf32>
    %cst_19 = arith.constant 4.471500e-02 : f32
    %20 = vector.broadcast %cst_19 : f32 to vector<4x256xf32>
    %21 = arith.mulf %20, %17 : vector<4x256xf32>
    %22 = arith.mulf %21, %17 : vector<4x256xf32>
    %23 = arith.mulf %22, %17 : vector<4x256xf32>
    %24 = arith.addf %17, %23 : vector<4x256xf32>
    %cst_20 = arith.constant 0.797884583 : f32
    %25 = vector.broadcast %cst_20 : f32 to vector<4x256xf32>
    %26 = arith.mulf %25, %24 : vector<4x256xf32>
    %27 = math.tanh %26 : vector<4x256xf32>
    %cst_21 = arith.constant 1.000000e+00 : f32
    %28 = vector.broadcast %cst_21 : f32 to vector<4x256xf32>
    %29 = arith.addf %28, %27 : vector<4x256xf32>
    %30 = arith.mulf %19, %29 : vector<4x256xf32>
    %31 = arith.truncf %30 : vector<4x256xf32> to vector<4x256xbf16>
    %c0_22 = arith.constant 0 : index
    %c0_23 = arith.constant 0 : index
    %c0_24 = arith.constant 0 : index
    %32 = vector.load %arg4[%c0_22, %c0_23, %c0_24] : memref<1x4x256xbf16, #tpu.memory_space<vmem>>, vector<1x4x256xbf16>
    %33 = vector.shape_cast %32 : vector<1x4x256xbf16> to vector<4x256xbf16>
    %34 = vector.shape_cast %31 : vector<4x256xbf16> to vector<1x4x256xbf16>
    tpu.vector_store %arg4[%c0_22, %c0_23, %c0_24], %34 {strides = array<i32>} : memref<1x4x256xbf16, #tpu.memory_space<vmem>>, vector<1x4x256xbf16>,
    return
  }
  func.func @transform_0(%arg0: i32) -> (i32, i32, i32, i32) {
    %c0_i32 = arith.constant 0 : i32
    %c0_i32_0 = arith.constant 0 : i32
    %c0_i32_1 = arith.constant 0 : i32
    %c0_i32_2 = arith.constant 0 : i32
    return %arg0, %c0_i32, %c0_i32_0, %c0_i32_1 : i32, i32, i32, i32
  }
  func.func @transform_1(%arg0: i32) -> (i32, i32) {
    %c0_i32 = arith.constant 0 : i32
    %c0_i32_0 = arith.constant 0 : i32
    %c0_i32_1 = arith.constant 0 : i32
    return %c0_i32, %c0_i32_0 : i32, i32
  }
  func.func @transform_2(%arg0: i32) -> (i32, i32) {
    %c0_i32 = arith.constant 0 : i32
    %c0_i32_0 = arith.constant 0 : i32
    %c0_i32_1 = arith.constant 0 : i32
    return %c0_i32, %c0_i32_0 : i32, i32
  }
  func.func @transform_3(%arg0: i32) -> (i32, i32, i32) {
    %c0_i32 = arith.constant 0 : i32
    %c0_i32_0 = arith.constant 0 : i32
    %c0_i32_1 = arith.constant 0 : i32
    return %arg0, %c0_i32, %c0_i32_0 : i32, i32, i32
  }
}

module attributes {stable_mosaic.version = 11 : i64} {
  func.func @convt_phase_kernel(%arg0: i32, %arg1: memref<1x5x5x64xbf16, #tpu.memory_space<vmem>>, %arg2: memref<256x128xbf16, #tpu.memory_space<vmem>>, %arg3: memref<1x128xf32, #tpu.memory_space<vmem>>, %arg4: memref<1x16x128xbf16, #tpu.memory_space<vmem>>) attributes {dimension_semantics = [#tpu.dimension_semantics<parallel>], iteration_bounds = array<i64: 2>, scalar_prefetch = 0 : i64, scratch_operands = 0 : i64, tpu.core_type = #tpu.core_type<tc>, window_params = [{transform_indices = @transform_0, window_bounds = array<i64: 1, 5, 5, 64>}, {pipeline_mode = #tpu.pipeline_mode<synchronous>, transform_indices = @transform_1, window_bounds = array<i64: 256, 128>}, {pipeline_mode = #tpu.pipeline_mode<synchronous>, transform_indices = @transform_2, window_bounds = array<i64: 1, 128>}, {transform_indices = @transform_3, window_bounds = array<i64: 1, 16, 128>}]} {
    %c0 = arith.constant 0 : index
    %c0_0 = arith.constant 0 : index
    %c0_1 = arith.constant 0 : index
    %c0_2 = arith.constant 0 : index
    %0 = vector.load %arg1[%c0, %c0_0, %c0_1, %c0_2] : memref<1x5x5x64xbf16, #tpu.memory_space<vmem>>, vector<1x4x4x64xbf16>
    %1 = vector.shape_cast %0 : vector<1x4x4x64xbf16> to vector<4x4x64xbf16>
    %2 = vector.shape_cast %1 : vector<4x4x64xbf16> to vector<16x64xbf16>
    %c0_3 = arith.constant 0 : index
    %c0_4 = arith.constant 0 : index
    %c1 = arith.constant 1 : index
    %c0_5 = arith.constant 0 : index
    %3 = vector.load %arg1[%c0_3, %c0_4, %c1, %c0_5] : memref<1x5x5x64xbf16, #tpu.memory_space<vmem>>, vector<1x4x4x64xbf16>
    %4 = vector.shape_cast %3 : vector<1x4x4x64xbf16> to vector<4x4x64xbf16>
    %5 = vector.shape_cast %4 : vector<4x4x64xbf16> to vector<16x64xbf16>
    %c0_6 = arith.constant 0 : index
    %c1_7 = arith.constant 1 : index
    %c0_8 = arith.constant 0 : index
    %c0_9 = arith.constant 0 : index
    %6 = vector.load %arg1[%c0_6, %c1_7, %c0_8, %c0_9] : memref<1x5x5x64xbf16, #tpu.memory_space<vmem>>, vector<1x4x4x64xbf16>
    %7 = vector.shape_cast %6 : vector<1x4x4x64xbf16> to vector<4x4x64xbf16>
    %8 = vector.shape_cast %7 : vector<4x4x64xbf16> to vector<16x64xbf16>
    %c0_10 = arith.constant 0 : index
    %c1_11 = arith.constant 1 : index
    %c1_12 = arith.constant 1 : index
    %c0_13 = arith.constant 0 : index
    %9 = vector.load %arg1[%c0_10, %c1_11, %c1_12, %c0_13] : memref<1x5x5x64xbf16, #tpu.memory_space<vmem>>, vector<1x4x4x64xbf16>
    %10 = vector.shape_cast %9 : vector<1x4x4x64xbf16> to vector<4x4x64xbf16>
    %11 = vector.shape_cast %10 : vector<4x4x64xbf16> to vector<16x64xbf16>
    %12 = tpu.concatenate %2, %5, %8, %11 in 1 : vector<16x64xbf16>, vector<16x64xbf16>, vector<16x64xbf16>, vector<16x64xbf16> -> vector<16x256xbf16>
    %c0_14 = arith.constant 0 : index
    %c0_15 = arith.constant 0 : index
    %13 = vector.load %arg2[%c0_14, %c0_15] : memref<256x128xbf16, #tpu.memory_space<vmem>>, vector<256x128xbf16>
    %cst = arith.constant dense<0.000000e+00> : vector<16x128xf32>
    %14 = tpu.matmul %12, %13, %cst {dimension_numbers = #tpu.dot_dimension_numbers<[1], [0], [0], [1], [0, 0, 1, 1], [], []>} : vector<16x256xbf16>, vector<256x128xbf16>, vector<16x128xf32> -> vector<16x128xf32>
    %c0_16 = arith.constant 0 : index
    %c0_17 = arith.constant 0 : index
    %15 = vector.load %arg3[%c0_16, %c0_17] : memref<1x128xf32, #tpu.memory_space<vmem>>, vector<1x128xf32>
    %16 = vector.broadcast %15 : vector<1x128xf32> to vector<16x128xf32>
    %17 = arith.addf %14, %16 : vector<16x128xf32>
    %cst_18 = arith.constant 5.000000e-01 : f32
    %18 = vector.broadcast %cst_18 : f32 to vector<16x128xf32>
    %19 = arith.mulf %18, %17 : vector<16x128xf32>
    %cst_19 = arith.constant 4.471500e-02 : f32
    %20 = vector.broadcast %cst_19 : f32 to vector<16x128xf32>
    %21 = arith.mulf %20, %17 : vector<16x128xf32>
    %22 = arith.mulf %21, %17 : vector<16x128xf32>
    %23 = arith.mulf %22, %17 : vector<16x128xf32>
    %24 = arith.addf %17, %23 : vector<16x128xf32>
    %cst_20 = arith.constant 0.797884583 : f32
    %25 = vector.broadcast %cst_20 : f32 to vector<16x128xf32>
    %26 = arith.mulf %25, %24 : vector<16x128xf32>
    %27 = math.tanh %26 : vector<16x128xf32>
    %cst_21 = arith.constant 1.000000e+00 : f32
    %28 = vector.broadcast %cst_21 : f32 to vector<16x128xf32>
    %29 = arith.addf %28, %27 : vector<16x128xf32>
    %30 = arith.mulf %19, %29 : vector<16x128xf32>
    %31 = arith.truncf %30 : vector<16x128xf32> to vector<16x128xbf16>
    %c0_22 = arith.constant 0 : index
    %c0_23 = arith.constant 0 : index
    %c0_24 = arith.constant 0 : index
    %32 = vector.load %arg4[%c0_22, %c0_23, %c0_24] : memref<1x16x128xbf16, #tpu.memory_space<vmem>>, vector<1x16x128xbf16>
    %33 = vector.shape_cast %32 : vector<1x16x128xbf16> to vector<16x128xbf16>
    %34 = vector.shape_cast %31 : vector<16x128xbf16> to vector<1x16x128xbf16>
    tpu.vector_store %arg4[%c0_22, %c0_23, %c0_24], %34 {strides = array<i32>} : memref<1x16x128xbf16, #tpu.memory_space<vmem>>, vector<1x16x128xbf16>,
    return
  }
  func.func @transform_0(%arg0: i32) -> (i32, i32, i32, i32) {
    %c0_i32 = arith.constant 0 : i32
    %c0_i32_0 = arith.constant 0 : i32
    %c0_i32_1 = arith.constant 0 : i32
    %c0_i32_2 = arith.constant 0 : i32
    return %arg0, %c0_i32, %c0_i32_0, %c0_i32_1 : i32, i32, i32, i32
  }
  func.func @transform_1(%arg0: i32) -> (i32, i32) {
    %c0_i32 = arith.constant 0 : i32
    %c0_i32_0 = arith.constant 0 : i32
    %c0_i32_1 = arith.constant 0 : i32
    return %c0_i32, %c0_i32_0 : i32, i32
  }
  func.func @transform_2(%arg0: i32) -> (i32, i32) {
    %c0_i32 = arith.constant 0 : i32
    %c0_i32_0 = arith.constant 0 : i32
    %c0_i32_1 = arith.constant 0 : i32
    return %c0_i32, %c0_i32_0 : i32, i32
  }
  func.func @transform_3(%arg0: i32) -> (i32, i32, i32) {
    %c0_i32 = arith.constant 0 : i32
    %c0_i32_0 = arith.constant 0 : i32
    %c0_i32_1 = arith.constant 0 : i32
    return %arg0, %c0_i32, %c0_i32_0 : i32, i32, i32
  }
}

module attributes {stable_mosaic.version = 11 : i64} {
  func.func @convt_phase_kernel(%arg0: i32, %arg1: memref<1x9x9x32xbf16, #tpu.memory_space<vmem>>, %arg2: memref<128x128xbf16, #tpu.memory_space<vmem>>, %arg3: memref<1x128xf32, #tpu.memory_space<vmem>>, %arg4: memref<1x64x128xf32, #tpu.memory_space<vmem>>) attributes {dimension_semantics = [#tpu.dimension_semantics<parallel>], iteration_bounds = array<i64: 2>, scalar_prefetch = 0 : i64, scratch_operands = 0 : i64, tpu.core_type = #tpu.core_type<tc>, window_params = [{transform_indices = @transform_0, window_bounds = array<i64: 1, 9, 9, 32>}, {pipeline_mode = #tpu.pipeline_mode<synchronous>, transform_indices = @transform_1, window_bounds = array<i64: 128, 128>}, {pipeline_mode = #tpu.pipeline_mode<synchronous>, transform_indices = @transform_2, window_bounds = array<i64: 1, 128>}, {transform_indices = @transform_3, window_bounds = array<i64: 1, 64, 128>}]} {
    %c0 = arith.constant 0 : index
    %c0_0 = arith.constant 0 : index
    %c0_1 = arith.constant 0 : index
    %c0_2 = arith.constant 0 : index
    %0 = vector.load %arg1[%c0, %c0_0, %c0_1, %c0_2] : memref<1x9x9x32xbf16, #tpu.memory_space<vmem>>, vector<1x8x8x32xbf16>
    %1 = vector.shape_cast %0 : vector<1x8x8x32xbf16> to vector<8x8x32xbf16>
    %2 = vector.shape_cast %1 : vector<8x8x32xbf16> to vector<64x32xbf16>
    %c0_3 = arith.constant 0 : index
    %c0_4 = arith.constant 0 : index
    %c1 = arith.constant 1 : index
    %c0_5 = arith.constant 0 : index
    %3 = vector.load %arg1[%c0_3, %c0_4, %c1, %c0_5] : memref<1x9x9x32xbf16, #tpu.memory_space<vmem>>, vector<1x8x8x32xbf16>
    %4 = vector.shape_cast %3 : vector<1x8x8x32xbf16> to vector<8x8x32xbf16>
    %5 = vector.shape_cast %4 : vector<8x8x32xbf16> to vector<64x32xbf16>
    %c0_6 = arith.constant 0 : index
    %c1_7 = arith.constant 1 : index
    %c0_8 = arith.constant 0 : index
    %c0_9 = arith.constant 0 : index
    %6 = vector.load %arg1[%c0_6, %c1_7, %c0_8, %c0_9] : memref<1x9x9x32xbf16, #tpu.memory_space<vmem>>, vector<1x8x8x32xbf16>
    %7 = vector.shape_cast %6 : vector<1x8x8x32xbf16> to vector<8x8x32xbf16>
    %8 = vector.shape_cast %7 : vector<8x8x32xbf16> to vector<64x32xbf16>
    %c0_10 = arith.constant 0 : index
    %c1_11 = arith.constant 1 : index
    %c1_12 = arith.constant 1 : index
    %c0_13 = arith.constant 0 : index
    %9 = vector.load %arg1[%c0_10, %c1_11, %c1_12, %c0_13] : memref<1x9x9x32xbf16, #tpu.memory_space<vmem>>, vector<1x8x8x32xbf16>
    %10 = vector.shape_cast %9 : vector<1x8x8x32xbf16> to vector<8x8x32xbf16>
    %11 = vector.shape_cast %10 : vector<8x8x32xbf16> to vector<64x32xbf16>
    %12 = tpu.concatenate %2, %5, %8, %11 in 1 : vector<64x32xbf16>, vector<64x32xbf16>, vector<64x32xbf16>, vector<64x32xbf16> -> vector<64x128xbf16>
    %c0_14 = arith.constant 0 : index
    %c0_15 = arith.constant 0 : index
    %13 = vector.load %arg2[%c0_14, %c0_15] : memref<128x128xbf16, #tpu.memory_space<vmem>>, vector<128x128xbf16>
    %cst = arith.constant dense<0.000000e+00> : vector<64x128xf32>
    %14 = tpu.matmul %12, %13, %cst {dimension_numbers = #tpu.dot_dimension_numbers<[1], [0], [0], [1], [0, 0, 1, 1], [], []>} : vector<64x128xbf16>, vector<128x128xbf16>, vector<64x128xf32> -> vector<64x128xf32>
    %c0_16 = arith.constant 0 : index
    %c0_17 = arith.constant 0 : index
    %15 = vector.load %arg3[%c0_16, %c0_17] : memref<1x128xf32, #tpu.memory_space<vmem>>, vector<1x128xf32>
    %16 = vector.broadcast %15 : vector<1x128xf32> to vector<64x128xf32>
    %17 = arith.addf %14, %16 : vector<64x128xf32>
    %18 = tpu.iota {dimensions = array<i32: 1>} : vector<64x128xi32>
    %c32_i32 = arith.constant 32 : i32
    %c0_i32 = arith.constant 0 : i32
    %19 = arith.cmpi eq, %c32_i32, %c0_i32 : i32
    %c1_i32 = arith.constant 1 : i32
    %20 = arith.select %19, %c1_i32, %c32_i32 : i32
    %21 = vector.broadcast %20 : i32 to vector<64x128xi32>
    %22 = arith.remsi %18, %21 : vector<64x128xi32>
    %c0_i32_18 = arith.constant 0 : i32
    %23 = vector.broadcast %c0_i32_18 : i32 to vector<64x128xi32>
    %24 = arith.cmpi ne, %22, %23 : vector<64x128xi32>
    %c0_i32_19 = arith.constant 0 : i32
    %25 = vector.broadcast %c0_i32_19 : i32 to vector<64x128xi32>
    %26 = arith.cmpi slt, %22, %25 : vector<64x128xi32>
    %c0_i32_20 = arith.constant 0 : i32
    %27 = arith.cmpi slt, %20, %c0_i32_20 : i32
    %28 = vector.broadcast %27 : i1 to vector<64x128xi1>
    %29 = vector.broadcast %28 : vector<64x128xi1> to vector<64x128xi1>
    %30 = arith.xori %26, %29 : vector<64x128xi1>
    %31 = arith.andi %30, %24 : vector<64x128xi1>
    %32 = vector.broadcast %20 : i32 to vector<64x128xi32>
    %33 = arith.addi %22, %32 : vector<64x128xi32>
    %34 = arith.select %31, %33, %22 : vector<64x128xi1>, vector<64x128xi32>
    %c2_i32 = arith.constant 2 : i32
    %35 = vector.broadcast %c2_i32 : i32 to vector<64x128xi32>
    %36 = arith.cmpi sge, %34, %35 : vector<64x128xi32>
    %cst_21 = arith.constant 2.000000e+01 : f32
    %37 = vector.broadcast %cst_21 : f32 to vector<64x128xf32>
    %38 = arith.cmpf ogt, %17, %37 : vector<64x128xf32>
    %cst_22 = arith.constant 2.000000e+01 : f32
    %39 = vector.broadcast %cst_22 : f32 to vector<64x128xf32>
    %40 = arith.minimumf %17, %39 : vector<64x128xf32>
    %41 = math.exp %40 : vector<64x128xf32>
    %42 = math.log1p %41 : vector<64x128xf32>
    %43 = arith.select %38, %17, %42 : vector<64x128xi1>, vector<64x128xf32>
    %44 = arith.select %36, %43, %17 : vector<64x128xi1>, vector<64x128xf32>
    %c0_23 = arith.constant 0 : index
    %c0_24 = arith.constant 0 : index
    %c0_25 = arith.constant 0 : index
    %45 = vector.load %arg4[%c0_23, %c0_24, %c0_25] : memref<1x64x128xf32, #tpu.memory_space<vmem>>, vector<1x64x128xf32>
    %46 = vector.shape_cast %45 : vector<1x64x128xf32> to vector<64x128xf32>
    %47 = vector.shape_cast %44 : vector<64x128xf32> to vector<1x64x128xf32>
    tpu.vector_store %arg4[%c0_23, %c0_24, %c0_25], %47 {strides = array<i32>} : memref<1x64x128xf32, #tpu.memory_space<vmem>>, vector<1x64x128xf32>,
    return
  }
  func.func @transform_0(%arg0: i32) -> (i32, i32, i32, i32) {
    %c0_i32 = arith.constant 0 : i32
    %c0_i32_0 = arith.constant 0 : i32
    %c0_i32_1 = arith.constant 0 : i32
    %c0_i32_2 = arith.constant 0 : i32
    return %arg0, %c0_i32, %c0_i32_0, %c0_i32_1 : i32, i32, i32, i32
  }
  func.func @transform_1(%arg0: i32) -> (i32, i32) {
    %c0_i32 = arith.constant 0 : i32
    %c0_i32_0 = arith.constant 0 : i32
    %c0_i32_1 = arith.constant 0 : i32
    return %c0_i32, %c0_i32_0 : i32, i32
  }
  func.func @transform_2(%arg0: i32) -> (i32, i32) {
    %c0_i32 = arith.constant 0 : i32
    %c0_i32_0 = arith.constant 0 : i32
    %c0_i32_1 = arith.constant 0 : i32
    return %c0_i32, %c0_i32_0 : i32, i32
  }
  func.func @transform_3(%arg0: i32) -> (i32, i32, i32) {
    %c0_i32 = arith.constant 0 : i32
    %c0_i32_0 = arith.constant 0 : i32
    %c0_i32_1 = arith.constant 0 : i32
    return %arg0, %c0_i32, %c0_i32_0 : i32, i32, i32
  }
}

</mosaic_0001>

<bundles_post_ra>
// kernel: vit_forward.5
= control target key start
LH: loop header
LB: loop body
LE: loop exit
PB: predicated region body
PF: predicated region fallthrough
CT: control target
= control target key end

     0   :  { %s701_s12 = smov 0   ;;  %s797_s0 = inlined_call_operand.vmem [shape: bf16[2,3,3,32], index: 0, kind: input, shape index: {}]   ;;  %s798_s1 = inlined_call_operand.vmem [shape: bf16[128,256], index: 1, kind: input, shape index: {}]   ;;  %s799_s2 = inlined_call_operand.vmem [shape: f32[1,256], index: 2, kind: input, shape index: {}]   ;;  %s800_s3 = inlined_call_operand.vmem [shape: bf16[2,4,256], index: 3, kind: output, shape index: {}]  }
   0x1 LB: > { %s585_s13 = sadd.s32 4294967295, %s674_s12   ;;  %p589_p0 = scmp.ge.s32.totalorder %s674_s12, 1  ;;  %s674_s12 = sphi %s701_s12, %s13_s12  }
   0x2   : > { %p137_p1 = scmp.lt.s32.totalorder %s674_s12, 3 }
   0x4   : > { %p138_p2 = pnand %p589_p0, %p137_p1 }
   0x5   : > { %p161_p3 = scmp.lt.s32.totalorder (!%p138_p2), %s585_s13, 1  ;;  %s678_s9 = smov (!%p138_p2), 32  }
   0x6   : > { %141 = sbr.rel (%p138_p2) target bundleno = 378 (0x17a), region = 32  ;;  %s680_s17 = smov (!%p138_p2), 64  }
   0xb   : > { %vm194_vm0 = vsmask.f32 256  ;;  %vm195_vm1 = vsmask.f32 1284  ;;  %vm197_vm3 = vsmask.f32 2312  ;;  %v274_v0 = vlaneseq }
   0xc   : > { %vm196_vm2 = vmor %vm194_vm0, %vm195_vm1  ;;  %vm199_vm4 = vsmask.f32 3340  ;;  %vm201_vm5 = vsmask.f32 4368  ;;  %s804_s13 = smov (!%p161_p3, %s585_s13), 1  ;;  %v677_v32 = vmov 0  }
   0xd   : > { %vm198_vm6 = vmor %vm196_vm2, %vm197_vm3  ;;  %vm203_vm7 = vsmask.f32 5396  ;;  %vm205_vm9 = vsmask.f32 6424  ;;  %s626_s14 = smul.u32 6, %s804_s13  ;;  %v723_v5 = vshrl.u32 %v274_v0, 7  ;;  %489 = vmatprep.mubr.bf16.mxu0 %v677_v32 }
   0xe   : > { %vm200_vm8 = vmor %vm198_vm6, %vm199_vm4  ;;  %v676_v1 = vmov 1966171168   ;;  %vm207_vm12 = vsmask.f32 7452  ;;  %v640_v3 = vld [vmem:[%s798_s1 + $0x74] ss:$8 sps:$4 sm:$0xff]  }
   0xf   : > { %vm202_vm10 = vmor %vm200_vm8, %vm201_vm5  ;;  %v272_v2 = vunpack.c.l.s4 %v676_v1  ;;  %v642_v4 = vld [vmem:[%s798_s1 + $0x70] ss:$8 sps:$4 sm:$0xff]   ;;  %s721_s21 = scalar_lea.vmem %s797_s0, %s626_s14  ;;  %457 = vmatprep.subr.bf16.mxu0 %v640_v3  ;;  %v643_v16 = vld [vmem:[%s798_s1 + $0x64] ss:$8 sps:$4 sm:$0xff]   ;;  %s679_s14 = smov 96   ;;  %vm338_vm15 = vcmask 261120  }
  0x10   : > { %vm204_vm11 = vmor %vm202_vm10, %vm203_vm7  ;;  %v593_v6 = vld.sshfl [vmem:[%s721_s21] sm:$0x11 pattern:$0x75316420]  ;;  %v597_v7 = vld [vmem:[%s721_s21 + $0x2] sm:$0x1]  ;;  %458 = vmatpush1.bf16.msra.mxu0 %v642_v4 }
  0x11   : > { %vm206_vm13 = vmor %vm204_vm11, %vm205_vm9  ;;  %v594_v8 = vld.sshfl [vmem:[%s721_s21 + $0x2] sm:$0x11 pattern:$0x75316420]  ;;  %v185_v9 = vcombine.high %v593_v6, %v593_v6  ;;  %v210_v11 = vshrl.u32 %v593_v6, 16  ;;  %v273_v12 = vunpack.c.0.s8 %v272_v2  ;;  %459 = vmatprep.subr.bf16.mxu0 %v643_v16  ;;  %vm342_vm0 = vcmask 523264  }
  0x12   : > { %vm728_vm14 = vmor %vm206_vm13, %vm207_vm12  ;;  %v193_v13 = vcombine.high %v594_v8, %v594_v8  ;;  %v219_v14 = vshrl.u32 %v594_v8, 16  ;;  %v598_v15 = vld [vmem:[%s721_s21 + $0x4] sm:$0x1]  ;;  %v645_v22 = vld [vmem:[%s798_s1 + $0x60] ss:$8 sps:$4 sm:$0xff]   ;;  %vm345_vm1 = vcmask 785408  }
  0x13   : > { %v215_v17 = vshll.u32 %v185_v9, 16  ;;  %v602_v18 = vld.sshfl [vmem:[%s721_s21 + $0x4] sm:$0x11 pattern:$0x75316420]  ;;  %v276_v25 = vsub.s32 %v273_v12, %v723_v5  ;;  %v304_v26 = vcombine.low %v597_v7, %v598_v15  ;;  %v369_v61 = vsub.s32 0, %v723_v5 }
  0x14   : > { %v224_v19 = vshll.u32 %v193_v13, 16  ;;  %v249_v20 = vcombine.high %v602_v18, %v602_v18  ;;  %v260_v21 = vshrl.u32 %v602_v18, 16  ;;  %v646_v23 = vld [vmem:[%s798_s1 + $0x54] ss:$8 sps:$4 sm:$0xff]   ;;  %460 = vmatpush1.bf16.msra.mxu0 %v645_v22  ;;  %v648_v29 = vld [vmem:[%s798_s1 + $0x50] ss:$8 sps:$4 sm:$0xff]  }
  0x15   : > { %v217_v24 = vsel %vm728_vm14, %v210_v11, %v215_v17  ;;  %461 = vmatprep.subr.bf16.mxu0 %v646_v23  ;;  %v649_v31 = vld [vmem:[%s798_s1 + $0x44] ss:$8 sps:$4 sm:$0xff]   ;;  %v311_v35 = vrot.slane %v304_v26, %v276_v25  ;;  %v651_v37 = vld [vmem:[%s798_s1 + $0x40] ss:$8 sps:$4 sm:$0xff]   ;;  %v652_v42 = vld [vmem:[%s798_s1 + $0x34] ss:$8 sps:$4 sm:$0xff]  }
  0x16   : > { %v226_v27 = vsel %vm728_vm14, %v219_v14, %v224_v19  ;;  %v265_v28 = vshll.u32 %v249_v20, 16  ;;  %v172_v38 = vld [vmem:[%s721_s21] sm:$0x1]  ;;  %v173_v39 = vld [vmem:[%s721_s21 + $0x2] sm:$0x1]  ;;  %v373_v63 = vsub.s32 1, %v723_v5 }
  0x17   : > { %v285_v30 = vcombine.low %v217_v24, %v226_v27  ;;  %v270_v43 = vcombine.low %v172_v38, %v173_v39  ;;  %v318_v44 = vrot.slane %v311_v35, %v276_v25  ;;  %v654_v47 = vld [vmem:[%s798_s1 + $0x30] ss:$8 sps:$4 sm:$0xff]   ;;  %v655_v48 = vld [vmem:[%s798_s1 + $0x24] ss:$8 sps:$4 sm:$0xff]   ;;  %v657_v50 = vld [vmem:[%s798_s1 + $0x20] ss:$8 sps:$4 sm:$0xff]  }
  0x18   : > { %v267_v33 = vsel %vm728_vm14, %v260_v21, %v265_v28  ;;  %462 = vmatpush1.bf16.msra.mxu0 %v648_v29  ;;  %v658_v51 = vld [vmem:[%s798_s1 + $0x14] ss:$8 sps:$4 sm:$0xff]   ;;  %v660_v52 = vld [vmem:[%s798_s1 + $0x10] ss:$8 sps:$4 sm:$0xff]   ;;  %v661_v53 = vld [vmem:[%s798_s1 + $0x4] ss:$8 sps:$4 sm:$0xff]  }
  0x19   : > { %v292_v34 = vrot.slane %v285_v30, %v276_v25  ;;  %v321_v36 = vcombine.low %v226_v27, %v267_v33  ;;  %463 = vmatprep.subr.bf16.mxu0 %v649_v31  ;;  %v277_v46 = vrot.slane %v270_v43, %v276_v25  ;;  %v663_v54 = vld [vmem:[%s798_s1] ss:$8 sps:$4 sm:$0xff]   ;;  %s625_s30 = sshll.u32 %s804_s13, 2 }
  0x1a   : > { %v365_v62 = vld [vmem:[%s799_s2] sm:$0x3]  ;;  %s170_s6 = scalar_lea.vmem %s800_s3, %s625_s30 }
  0x1b   : > { %v299_v40 = vrot.slane %v292_v34, %v276_v25  ;;  %v328_v41 = vrot.slane %v321_v36, %v276_v25  ;;  %v284_v49 = vrot.slane %v277_v46, %v276_v25  ;;  %v370_v0 = vrot.slane %v365_v62, %v369_v61 }
  0x1c   : > { %464 = vmatpush1.bf16.msra.mxu0 %v651_v37  ;;  %v374_v1 = vrot.slane %v365_v62, %v373_v63 }
  0x1d   : > { %300 = vrot.lane.b32.xlu0 %v299_v40, %s678_s9  ;;  %v335_v45 = vrot.slane %v328_v41, %v276_v25  ;;  %465 = vmatprep.subr.bf16.mxu0 %v652_v42 }
  0x1f   : > { %336 = vrot.lane.b32.xlu1 %v335_v45, %s679_s14 }
  0x20   : > { %466 = vmatpush1.bf16.msra.mxu0 %v654_v47 }
  0x21   : > { %319 = vrot.lane.b32.xlu0 %v318_v44, %s680_s17  ;;  %467 = vmatprep.subr.bf16.mxu0 %v655_v48 }
  0x24   : > { %468 = vmatpush1.bf16.msra.mxu0 %v657_v50 }
  0x25   : > { %469 = vmatprep.subr.bf16.mxu0 %v658_v51 }
  0x28   : > { %470 = vmatpush1.bf16.msra.mxu0 %v660_v52 }
  0x29   : > { %471 = vmatprep.subr.bf16.mxu0 %v661_v53 }
  0x2c   : > { %472 = vmatpush1.bf16.msra.mxu0 %v663_v54 }
  0x8f   : > { %v301_v55 = vpop.permute.xlu0 %300 }
  0x90   : > { %v341_v57 = vsel %vm338_vm15, %v284_v49, %v301_v55 }
  0x91   : > { %v337_v56 = vpop.permute.xlu1 %336 }
  0x93   : > { %v320_v58 = vpop.permute.xlu0 %319 }
  0x94   : > { %v344_v59 = vsel %vm342_vm0, %v341_v57, %v320_v58 }
  0x95   : > { %v347_v60 = vsel %vm345_vm1, %v344_v59, %v337_v56 }
  0x96   : > { %490 = vmatmul.mubr.bf16.vlgmr.msra.gmra.mxu0 %v347_v60 }
 0x156   : > { %v491_v2 = vpop.f32.mrf.mxu0 }
 0x157   : > { %v492_v3 = vadd.f32 %v491_v2, %v370_v0 }
 0x158   : > { %v493_v4 = vpop.f32.mrf.mxu0 }
 0x159   : > { %v500_v6 = vmul.f32 0.044715, %v492_v3  ;;  %v494_v7 = vadd.f32 %v493_v4, %v374_v1  ;;  %v498_v21 = vmul.f32 0.5, %v492_v3 }
 0x15a   : > { %v495_v8 = vpop.f32.mrf.mxu0 }
 0x15b   : > { %v502_v9 = vmul.f32 %v500_v6, %v492_v3  ;;  %v501_v10 = vmul.f32 0.044715, %v494_v7  ;;  %v499_v22 = vmul.f32 0.5, %v494_v7 }
 0x15c   : > { %v496_v11 = vpop.f32.mrf.mxu0 }
 0x15d   : > { %v504_v12 = vmul.f32 %v502_v9, %v492_v3  ;;  %v503_v13 = vmul.f32 %v501_v10, %v494_v7 }
 0x15f   : > { %v506_v14 = vadd.f32 %v504_v12, %v492_v3  ;;  %v505_v15 = vmul.f32 %v503_v13, %v494_v7 }
 0x161   : > { %v508_v16 = vmul.f32 0.7978846, %v506_v14  ;;  %v507_v17 = vadd.f32 %v505_v15, %v494_v7 }
 0x163   : > { %664 = vtanh.f32 %v508_v16  ;;  %v509_v5 = vmul.f32 0.7978846, %v507_v17 }
 0x165   : > { %666 = vtanh.f32 %v509_v5 }
 0x170   : > { %v665_v18 = vpop.eup %664 }
 0x171   : > { %v512_v19 = vadd.f32 1.0, %v665_v18 }
 0x172   : > { %v667_v20 = vpop.eup %666 }
 0x173   : > { %v513_v23 = vadd.f32 1.0, %v667_v20  ;;  %v514_v24 = vmul.f32 %v512_v19, %v498_v21 }
 0x175   : > { %v515_v25 = vmul.f32 %v513_v23, %v499_v22 }
 0x177   : > { %v621_v26 = vpack.c.bf16 %v515_v25, %v514_v24 }
 0x179   : > { %622 = vst.sshfl [vmem:[%s170_s6] sm:$0x33 pattern:$0x76325410] %v621_v26 }
 0x17a PF: > { %s13_s12 = sadd.s32 1, %s674_s12  }
 0x17b   : > { %p10_p4 = scmp.ge.s32.totalorder %s13_s12, 4  }
 0x17d   :  { %12 = sbr.rel (!%p10_p4) target bundleno = 1 (0x1), region = 63 }

// kernel: vit_forward.6
= control target key start
LH: loop header
LB: loop body
LE: loop exit
PB: predicated region body
PF: predicated region fallthrough
CT: control target
= control target key end

     0   :  { %s872_s12 = smov 0   ;;  %s981_s0 = inlined_call_operand.vmem [shape: bf16[2,5,5,64], index: 0, kind: input, shape index: {}]   ;;  %s982_s1 = inlined_call_operand.vmem [shape: bf16[256,128], index: 1, kind: input, shape index: {}]   ;;  %s983_s2 = inlined_call_operand.vmem [shape: f32[1,128], index: 2, kind: input, shape index: {}]   ;;  %s984_s3 = inlined_call_operand.vmem [shape: bf16[2,16,128], index: 3, kind: output, shape index: {}]  }
   0x1 LB: > { %s728_s13 = sadd.s32 4294967295, %s848_s12   ;;  %p732_p0 = scmp.ge.s32.totalorder %s848_s12, 1  ;;  %s848_s12 = sphi %s872_s12, %s13_s12  }
   0x2   : > { %p137_p1 = scmp.lt.s32.totalorder %s848_s12, 3 }
   0x4   : > { %p138_p2 = pnand %p732_p0, %p137_p1 }
   0x5   : > { %p161_p3 = scmp.lt.s32.totalorder (!%p138_p2), %s728_s13, 1  ;;  %s851_s24 = smov (!%p138_p2), 64  }
   0x6   : > { %141 = sbr.rel (%p138_p2) target bundleno = 393 (0x189), region = 32 }
   0xb   : > { %vm216_vm0 = vsmask.f32 1280  ;;  %vm217_vm1 = vsmask.f32 3336  ;;  %vm219_vm2 = vsmask.f32 5392  ;;  %v389_v0 = vlaneseq }
   0xc   : > { %s990_s13 = smov (!%p161_p3, %s728_s13), 1  ;;  %vm221_vm3 = vsmask.f32 7448  ;;  %v814_v1 = vld [vmem:[%s982_s1 + $0x78] sm:$0xff]   ;;  %v816_v3 = vld [vmem:[%s982_s1 + $0x70] sm:$0xff]   ;;  %vm218_vm4 = vmor %vm216_vm0, %vm217_vm1  ;;  %vm460_vm7 = vcmask 523264  }
   0xd   : > { %s803_s16 = smul.u32 20, %s990_s13  ;;  %v815_v2 = vld [vmem:[%s982_s1 + $0x38] sm:$0xff]   ;;  %781 = vmatprep.subr.bf16.mxu0 %v814_v1  ;;  %v897_v4 = vshrl.u32 %v389_v0, 7  ;;  %v817_v5 = vld [vmem:[%s982_s1 + $0x30] sm:$0xff]   ;;  %vm907_vm5 = vmor %vm218_vm4, %vm219_vm2  ;;  %v850_v20 = vmov 1983009808  }
   0xe   : > { %782 = vmatpush3.bf16.msra.mxu0 %v815_v2  ;;  %v387_v21 = vunpack.c.l.s4 %v850_v20  ;;  %v818_v26 = vld [vmem:[%s982_s1 + $0x68] sm:$0xff]   ;;  %vm921_vm6 = vmor %vm907_vm5, %vm221_vm3  ;;  %v820_v37 = vld [vmem:[%s982_s1 + $0x60] sm:$0xff]  }
   0xf   : > { %s895_s23 = scalar_lea.vmem %s981_s0, %s803_s16  ;;  %783 = vmatprep.subr.bf16.mxu0 %v816_v3  ;;  %v819_v31 = vld [vmem:[%s982_s1 + $0x28] sm:$0xff]   ;;  %v821_v51 = vld [vmem:[%s982_s1 + $0x20] sm:$0xff]   ;;  %v822_v59 = vld [vmem:[%s982_s1 + $0x58] sm:$0xff]  }
  0x10   : > { %v748_v6 = vld.sshfl [vmem:[%s895_s23 + $0x4] sm:$0x13 pattern:$0x76325410]  ;;  %v388_v49 = vunpack.c.0.s8 %v387_v21  ;;  %v823_v2 = vld [vmem:[%s982_s1 + $0x18] sm:$0xff]   ;;  %v827_v15 = vld [vmem:[%s982_s1 + $0x8] sm:$0xff]  }
  0x11   : > { %v749_v7 = vld.sshfl [vmem:[%s895_s23 + $0x8] sm:$0x13 pattern:$0x76325410]  ;;  %v299_v8 = vcombine.high %v748_v6, %v748_v6  ;;  %v325_v9 = vshrl.u32 %v748_v6, 16  ;;  %v328_v10 = vshll.u32 %v748_v6, 16 }
  0x12   : > { %v750_v11 = vld.sshfl [vmem:[%s895_s23 + $0xc] sm:$0x13 pattern:$0x76325410]  ;;  %v307_v12 = vcombine.high %v749_v7, %v749_v7  ;;  %v339_v13 = vshrl.u32 %v749_v7, 16  ;;  %v342_v14 = vshll.u32 %v749_v7, 16  ;;  %784 = vmatpush3.bf16.msra.mxu0 %v817_v5  ;;  %v391_v63 = vsub.s32 %v388_v49, %v897_v4 }
  0x13   : > { %v751_v16 = vld.sshfl [vmem:[%s895_s23 + $0x10] sm:$0x13 pattern:$0x76325410]  ;;  %v315_v17 = vcombine.high %v750_v11, %v750_v11  ;;  %v327_v18 = vrot.slane %v325_v9, 6  ;;  %v330_v19 = vrot.slane %v328_v10, 7  ;;  %785 = vmatprep.subr.bf16.mxu0 %v818_v26 }
  0x14   : > { %v323_v22 = vcombine.high %v751_v16, %v751_v16  ;;  %v334_v23 = vshll.u32 %v299_v8, 16  ;;  %v341_v24 = vrot.slane %v339_v13, 6  ;;  %v344_v25 = vrot.slane %v342_v14, 7  ;;  %v824_v7 = vld [vmem:[%s982_s1 + $0x50] sm:$0xff]   ;;  %v831_v26 = vld [vmem:[%s982_s1] sm:$0xff]  }
  0x15   : > { %v331_v27 = vor.u32 %v330_v19, %v327_v18  ;;  %v348_v28 = vshll.u32 %v307_v12, 16  ;;  %v353_v29 = vshrl.u32 %v750_v11, 16  ;;  %v356_v30 = vshll.u32 %v750_v11, 16  ;;  %v825_v4 = vld [vmem:[%s982_s1 + $0x10] sm:$0xff]   ;;  %v826_v11 = vld [vmem:[%s982_s1 + $0x48] sm:$0xff]  }
  0x16   : > { %v336_v33 = vrot.slane %v334_v23, 7  ;;  %v345_v34 = vor.u32 %v344_v25, %v341_v24  ;;  %v362_v35 = vshll.u32 %v315_v17, 16  ;;  %v367_v36 = vshrl.u32 %v751_v16, 16  ;;  %786 = vmatpush3.bf16.msra.mxu0 %v819_v31 }
  0x17   : > { %v332_v38 = vrot.slane %v331_v27, 2  ;;  %v350_v39 = vrot.slane %v348_v28, 7  ;;  %v355_v40 = vrot.slane %v353_v29, 6  ;;  %v358_v41 = vrot.slane %v356_v30, 7  ;;  %787 = vmatprep.subr.bf16.mxu0 %v820_v37 }
  0x18   : > { %v346_v42 = vrot.slane %v345_v34, 2  ;;  %v364_v43 = vrot.slane %v362_v35, 7  ;;  %v369_v44 = vrot.slane %v367_v36, 6  ;;  %v370_v45 = vshll.u32 %v751_v16, 16  ;;  %v828_v16 = vld [vmem:[%s982_s1 + $0x40] sm:$0xff]  }
  0x19   : > { %v337_v46 = vsel %vm921_vm6, %v332_v38, %v336_v33  ;;  %v359_v47 = vor.u32 %v358_v41, %v355_v40  ;;  %v376_v48 = vshll.u32 %v323_v22, 16  ;;  %v736_v50 = vld.sshfl [vmem:[%s895_s23] sm:$0x13 pattern:$0x76325410] }
  0x1a   : > { %v351_v52 = vsel %vm921_vm6, %v346_v42, %v350_v39  ;;  %v372_v53 = vrot.slane %v370_v45, 7  ;;  %v191_v54 = vcombine.high %v736_v50, %v736_v50  ;;  %v224_v55 = vshrl.u32 %v736_v50, 16  ;;  %788 = vmatpush3.bf16.msra.mxu0 %v821_v51  ;;  %v838_v19 = vld.sshfl [vmem:[%s895_s23 + $0x4] sm:$0xf pattern:$0x76325410] }
  0x1b   : > { %v360_v56 = vrot.slane %v359_v47, 2  ;;  %v378_v57 = vrot.slane %v376_v48, 7  ;;  %v227_v58 = vshll.u32 %v736_v50, 16  ;;  %v441_v0 = vcombine.low %v337_v46, %v351_v52  ;;  %789 = vmatprep.subr.bf16.mxu0 %v822_v59  ;;  %v752_v36 = vld [vmem:[%s983_s2] ss:$0 sm:$0xff] }
  0x1c   : > { %v373_v60 = vor.u32 %v372_v53, %v369_v44  ;;  %v226_v61 = vrot.slane %v224_v55, 6  ;;  %v233_v62 = vshll.u32 %v191_v54, 16  ;;  %v839_v22 = vld.sshfl [vmem:[%s895_s23 + $0xc] sm:$0xf pattern:$0x76325410] }
  0x1d   : > { %v229_v1 = vrot.slane %v227_v58, 7  ;;  %v365_v3 = vsel %vm921_vm6, %v360_v56, %v364_v43  ;;  %v449_v13 = vrot.slane %v441_v0, %v391_v63  ;;  %v840_v25 = vld.sshfl [vmem:[%s895_s23] sm:$0xf pattern:$0x76325410]  ;;  %v440_v29 = vcombine.low %v838_v19, %v839_v22 }
  0x1e   : > { %v374_v5 = vrot.slane %v373_v60, 2  ;;  %v235_v6 = vrot.slane %v233_v62, 7  ;;  %790 = vmatpush3.bf16.msra.mxu0 %v823_v2  ;;  %v402_v10 = vcombine.low %v351_v52, %v365_v3  ;;  %v841_v27 = vld.sshfl [vmem:[%s895_s23 + $0x8] sm:$0xf pattern:$0x76325410] }
  0x1f   : > { %v230_v8 = vor.u32 %v229_v1, %v226_v61  ;;  %791 = vmatprep.subr.bf16.mxu0 %v824_v7  ;;  %v400_v30 = vcombine.low %v840_v25, %v841_v27  ;;  %s773_s23 = sshll.u32 %s990_s13, 3 }
  0x20   : > { %v379_v9 = vsel %vm921_vm6, %v374_v5, %v378_v57  ;;  %v416_v21 = vrot.slane %v402_v10, %v391_v63  ;;  %s170_s4 = scalar_lea.vmem %s984_s3, %s773_s23 }
  0x21   : > { %v442_v12 = vcombine.low %v365_v3, %v379_v9  ;;  %v231_v14 = vrot.slane %v230_v8, 2 }
  0x22   : > { %792 = vmatpush3.bf16.msra.mxu0 %v825_v4 }
  0x23   : > { %v456_v17 = vrot.slane %v442_v12, %v391_v63  ;;  %v236_v18 = vsel %vm921_vm6, %v231_v14, %v235_v6  ;;  %793 = vmatprep.subr.bf16.mxu0 %v826_v11 }
  0x24   : > { %v401_v20 = vcombine.low %v236_v18, %v337_v46 }
  0x25   : > { %v457_v23 = vcombine.low %v449_v13, %v456_v17 }
  0x26   : > { %v409_v24 = vrot.slane %v401_v20, %v391_v63  ;;  %794 = vmatpush3.bf16.msra.mxu0 %v827_v15 }
  0x27   : > { %458 = vrot.lane.b32.xlu0 %v457_v23, %s851_s24  ;;  %795 = vmatprep.subr.bf16.mxu0 %v828_v16 }
  0x28   : > { %v417_v28 = vcombine.low %v409_v24, %v416_v21 }
  0x2a   : > { %796 = vmatpush3.bf16.msra.mxu0 %v831_v26 }
  0x2b   : > { %418 = vrot.lane.b32.xlu0 %v417_v28, %s851_s24 }
  0x99   : > { %v459_v31 = vpop.permute.xlu0 %458 }
  0x9a   : > { %v467_v32 = vsel %vm460_vm7, %v440_v29, %v459_v31 }
  0x9b   : > { %636 = vmatprep.mubr.bf16.mxu0 %v467_v32 }
  0x9d   : > { %v419_v33 = vpop.permute.xlu0 %418 }
  0x9e   : > { %v463_v34 = vsel %vm460_vm7, %v400_v30, %v419_v33 }
  0x9f   : > { %637 = vmatmul.mubr.bf16.vlgmr.msra.gmra.mxu0 %v463_v34 }
 0x15f   : > { %v797_v35 = vpop.f32.mrf.mxu0 }
 0x161   : > { %v798_v37 = vpop.f32.mrf.mxu0 }
 0x162   : > { %v799_v38 = vadd.f32 %v798_v37, %v797_v35 }
 0x163   : > { %v800_v39 = vpop.f32.mrf.mxu0 }
 0x164   : > { %v639_v40 = vadd.f32 %v799_v38, %v752_v36 }
 0x165   : > { %v801_v41 = vpop.f32.mrf.mxu0 }
 0x166   : > { %v647_v42 = vmul.f32 0.044715, %v639_v40  ;;  %v802_v43 = vadd.f32 %v801_v41, %v800_v39  ;;  %v645_v57 = vmul.f32 0.5, %v639_v40 }
 0x168   : > { %v649_v44 = vmul.f32 %v647_v42, %v639_v40  ;;  %v642_v45 = vadd.f32 %v802_v43, %v752_v36 }
 0x16a   : > { %v651_v46 = vmul.f32 %v649_v44, %v639_v40  ;;  %v648_v47 = vmul.f32 0.044715, %v642_v45  ;;  %v646_v58 = vmul.f32 0.5, %v642_v45 }
 0x16c   : > { %v653_v48 = vadd.f32 %v651_v46, %v639_v40  ;;  %v650_v49 = vmul.f32 %v648_v47, %v642_v45 }
 0x16e   : > { %v655_v50 = vmul.f32 0.7978846, %v653_v48  ;;  %v652_v51 = vmul.f32 %v650_v49, %v642_v45 }
 0x170   : > { %834 = vtanh.f32 %v655_v50  ;;  %v654_v52 = vadd.f32 %v652_v51, %v642_v45 }
 0x172   : > { %v656_v53 = vmul.f32 0.7978846, %v654_v52 }
 0x174   : > { %836 = vtanh.f32 %v656_v53 }
 0x17d   : > { %v835_v54 = vpop.eup %834 }
 0x17e   : > { %v659_v55 = vadd.f32 1.0, %v835_v54 }
 0x180   : > { %v661_v60 = vmul.f32 %v659_v55, %v645_v57 }
 0x181   : > { %v837_v56 = vpop.eup %836 }
 0x182   : > { %v660_v59 = vadd.f32 1.0, %v837_v56 }
 0x184   : > { %v662_v61 = vmul.f32 %v660_v59, %v646_v58 }
 0x186   : > { %v779_v62 = vpack.c.bf16 %v662_v61, %v661_v60 }
 0x188   : > { %780 = vst [vmem:[%s170_s4] sm:$0xff] %v779_v62  }
 0x189 PF: > { %s13_s12 = sadd.s32 1, %s848_s12  }
 0x18a   : > { %p10_p4 = scmp.ge.s32.totalorder %s13_s12, 4  }
 0x18c   :  { %12 = sbr.rel (!%p10_p4) target bundleno = 1 (0x1), region = 63 }

// kernel: vit_forward.4
= control target key start
LH: loop header
LB: loop body
LE: loop exit
PB: predicated region body
PF: predicated region fallthrough
CT: control target
= control target key end

     0   :  { %s2437_s29 = smov 0   ;;  %s2439_s30 = smov 0   ;;  %s2775_s0 = inlined_call_operand.vmem [shape: f32[2,4,32], index: 0, kind: input, shape index: {}]   ;;  %s2776_s1 = inlined_call_operand.vmem [shape: f32[2,1,32], index: 1, kind: input, shape index: {}]   ;;  %s2777_s2 = inlined_call_operand.vmem [shape: f32[2,1,32], index: 2, kind: input, shape index: {}]   ;;  %s2778_s3 = inlined_call_operand.vmem [shape: bf16[2,32,96], index: 3, kind: input, shape index: {}]   ;;  %s2779_s4 = inlined_call_operand.vmem [shape: bf16[2,32,32], index: 4, kind: input, shape index: {}]   ;;  %s2780_s5 = inlined_call_operand.vmem [shape: f32[2,1,32], index: 5, kind: input, shape index: {}]   ;;  %s2781_s6 = inlined_call_operand.vmem [shape: f32[2,1,32], index: 6, kind: input, shape index: {}]   ;;  %s2782_s7 = inlined_call_operand.vmem [shape: f32[2,1,32], index: 7, kind: input, shape index: {}]   ;;  %s2783_s8 = inlined_call_operand.vmem [shape: bf16[2,32,128], index: 8, kind: input, shape index: {}]   ;;  %s2784_s9 = inlined_call_operand.vmem [shape: f32[2,1,128], index: 9, kind: input, shape index: {}]   ;;  %s2785_s10 = inlined_call_operand.vmem [shape: bf16[2,128,32], index: 10, kind: input, shape index: {}]   ;;  %s2786_s11 = inlined_call_operand.vmem [shape: f32[2,1,32], index: 11, kind: input, shape index: {}]   ;;  %s2787_s12 = inlined_call_operand.vmem [shape: f32[1,32], index: 12, kind: input, shape index: {}]   ;;  %s2788_s13 = inlined_call_operand.vmem [shape: f32[1,32], index: 13, kind: input, shape index: {}]   ;;  %s2789_s14 = inlined_call_operand.vmem [shape: f32[2,4,32], index: 14, kind: output, shape index: {}]  }
   0x1   :  { %2795 = sst [smem:[#allocation9_spill]] %s2775_s0  ;;  %s2441_s15 = smov 0  }
   0x2   :  { %2796 = sst [smem:[#allocation10_spill]] %s2778_s3  ;;  %s2443_s16 = smov 0  }
   0x3   :  { %2797 = sst [smem:[#allocation11_spill]] %s2779_s4  ;;  %s2445_s17 = smov 0  }
   0x4   :  { %2798 = sst [smem:[#allocation12_spill]] %s2787_s12 }
   0x5   :  { %2799 = sst [smem:[#allocation13_spill]] %s2788_s13 }
   0x6 LB: > { %2800 = sst [smem:[#allocation2_spill]] %s2332_s29  ;;  %s33_s18 = sadd.s32 1, %s2340_s15  ;;  %s2348_s17 = sphi %s2445_s17, %s24_s17   ;;  %s2344_s16 = sphi %s2443_s16, %s2823_s16   ;;  %s2340_s15 = sphi %s2441_s15, %s2822_s15   ;;  %s2336_s30 = sphi %s2439_s30, %s2821_s30   ;;  %s2332_s29 = sphi %s2437_s29, %s2820_s29  }
   0x7   : > { %2801 = sst [smem:[#allocation3_spill]] %s2340_s15  ;;  %s36_s19 = sadd.s32 1, %s2344_s16 }
   0x8   : > { %2802 = sst [smem:[#allocation4_spill]] %s2344_s16  ;;  %p34_p0 = scmp.ge.s32.totalorder %s33_s18, 2 }
   0x9   : > { %2803 = sst [smem:[#allocation5_spill]] %s2348_s17  ;;  %p2031_p1 = scmp.ge.s32.totalorder %s2348_s17, 1 }
   0xa   : > { %p519_p2 = scmp.lt.s32.totalorder %s2348_s17, 5  ;;  %s2825_s18 = smov (%p34_p0, %s33_s18), 0 }
   0xb   : > { %2804 = sst [smem:[#allocation6_spill]] %s2825_s18  ;;  %s2827_s19 = smov (!%p34_p0, %s36_s19), %s2344_s16 }
   0xc   : > { %p520_p3 = pnand %p2031_p1, %p519_p2  ;;  %p38_p4 = scmp.ge.s32.totalorder %s2827_s19, 2 }
   0xe   : > { %s2829_s19 = smov (%p38_p4, %s2827_s19), 0  ;;  %523 = sbr.rel (%p520_p3) target bundleno = 3021 (0xbcd), region = 76 }
   0xf   : > { %2805 = sst [smem:[#allocation7_spill]] %s2829_s19 }
  0x13   : > { %p604_p5 = scmp.lt.s32.totalorder %s2336_s30, 1  ;;  %p608_p6 = scmp.lt.s32.totalorder %s2332_s29, 1 }
  0x14   : > { %s2806_s0 = sld [smem:[#allocation9_spill]] }
  0x15   : > { %s2831_s30 = smov (!%p604_p5, %s2336_s30), 1  ;;  %s2807_s3 = sld [smem:[#allocation10_spill]] }
  0x16   : > { %s2471_s20 = scalar_select %p608_p6, %s2332_s29, 1 }
  0x17   : > { %s2032_s21 = sshll.u32 %s2831_s30, 2  ;;  %s2808_s4 = sld [smem:[#allocation11_spill]] }
  0x18   : > { %s2084_s16 = sshll.u32 %s2471_s20, 4  ;;  %s629_s19 = scalar_lea.vmem %s2781_s6, %s2471_s20 }
  0x19   : > { %s648_s18 = scalar_lea.vmem %s2786_s11, %s2471_s20  ;;  %s2529_s15 = scalar_lea.vmem %s2789_s14, %s2032_s21 }
  0x1a   : > { %s607_s24 = scalar_lea.vmem %s2806_s0, %s2032_s21 }
  0x1b   : > { %s2488_s13 = scalar_lea.vmem %s2807_s3, %s2084_s16  ;;  %s2510_s3 = scalar_lea.vmem %s2783_s8, %s2084_s16 }
  0x1d   : > { %s2493_s29 = scalar_lea.vmem %s2808_s4, %s2084_s16  ;;  %s640_s4 = scalar_lea.vmem %s2784_s9, %s2471_s20 }
  0x1e   : > { %2809 = sst [smem:[#allocation8_spill]] %s2493_s29  ;;  %s2087_s29 = sshll.u32 %s2471_s20, 6 }
  0x1f   : > { %s2520_s25 = scalar_lea.vmem %s2785_s10, %s2087_s29  ;;  %s2810_s16 = sld [smem:[#allocation2_spill]] }
  0x25   : > { %p2042_p7 = scmp.ne.s32.totalorder %s2810_s16, 0 }
  0x27   : > { %657 = sbr.rel (%p2042_p7) target bundleno = 46 (0x2e), region = 80 }
  0x2c   : > { %v658_v0 = vld [vmem:[%s607_s24] sm:$0xf]  ;;  %vm659_vm0 = vcmask 257024  }
  0x2d   : > { %660 = vst.msk [vmem:[%s2529_s15] sm:$0xf] %vm659_vm0, %v658_v0 }
  0x2e PF: > { %vm664_vm1 = vcmask 257024   ;;  %v2266_v8 = vld [vmem:[%s2488_s13 + $0x8] sm:$0xff]   ;;  %v2350_v9 = vmov 0.0   ;;  %vm2351_vm2 = vmmov 0   ;;  %v2267_v10 = vld [vmem:[%s2488_s13] sm:$0xff]   ;;  %s2811_s29 = scalar_lea.vmem %s2776_s1, %s2471_s20  ;;  %s2812_s17 = scalar_lea.vmem %s2777_s2, %s2471_s20  ;;  %vm717_vm5 = vcmask 261120  }
  0x2f   : > { %2122 = vmatprep.subr.bf16.mxu0 %v2350_v9  ;;  %2126 = vmatprep.mubr.msk.bf16.mxu0 %vm2351_vm2, %v2350_v9  ;;  %v2043_v20 = vld [vmem:[%s2811_s29] ss:$0 sm:$0xff]  ;;  %s2352_s12 = smov 104   ;;  %s2353_s30 = smov 120   ;;  %v2356_v33 = vmov 1983009808   ;;  %v775_v35 = vlaneseq }
  0x30   : > { %2123 = vmatpush3.bf16.msra.mxu0 %v2266_v8  ;;  %2142 = vmatprep.subr.bf16.mxu1 %v2350_v9  ;;  %v2044_v22 = vld [vmem:[%s2812_s17] ss:$0 sm:$0xff]  ;;  %s2354_s22 = smov 112   ;;  %s2355_s23 = smov 96   ;;  %v773_v34 = vunpack.c.l.s4 %v2356_v33  ;;  %v2357_v40 = vmov 1934713408  }
  0x31   : > { %2124 = vmatprep.subr.bf16.mxu0 %v2350_v9  ;;  %2144 = vmatprep.mubr.msk.bf16.mxu1 %vm2351_vm2, %v2350_v9  ;;  %v776_v38 = vshrl.u32 %v775_v35, 7  ;;  %v790_v41 = vunpack.c.l.s4 %v2357_v40  ;;  %vm1007_vm6 = vcmask 64512   ;;  %vm1192_vm7 = vcmask 27648   ;;  %s2358_s27 = smov 64   ;;  %s2813_s26 = sld [smem:[#allocation8_spill]] }
  0x32   : > { %v774_v37 = vunpack.c.0.s8 %v773_v34  ;;  %vm1249_vm8 = vcmask 1041408   ;;  %vm1245_vm9 = vcmask 31744   ;;  %s2359_s28 = smov 16   ;;  %s2360_s16 = smov 8   ;;  %vm1512_vm10 = vcmask 130048  }
  0x33   : > { %v791_v46 = vunpack.c.0.s8 %v790_v41  ;;  %s2361_s0 = smov 24   ;;  %vm1514_vm11 = vcmask 195584   ;;  %s2814_s21 = scalar_lea.vmem %s2780_s5, %s2471_s20 }
  0x34   : > { %v2534_v1 = vld [vmem:[%s2529_s15] sm:$0xf]  ;;  %2125 = vmatpush3.bf16.msra.mxu0 %v2267_v10  ;;  %v2580_v43 = vsub.s32 %v774_v37, %v776_v38 }
  0x35   : > { %v665_v2 = vsel %vm664_vm1, %v2534_v1, 0.0  ;;  %2130 = vmatprep.subr.bf16.mxu0 %v2350_v9  ;;  %v2586_v51 = vsub.s32 %v791_v46, %v776_v38 }
  0x36   : > { %666 = vadd.xlane.f32.xlu0 %v665_v2 }
  0xbf   : > { %v667_v3 = vpop.xlane.xlu0 %666 }
  0xc0   : > { %v669_v4 = vmul.f32 0.03125, %v667_v3 }
  0xc2   : > { %v670_v5 = vsub.f32 %v2534_v1, %v669_v4 }
  0xc4   : > { %v671_v6 = vmul.f32 %v670_v5, %v670_v5 }
  0xc6   : > { %v672_v7 = vsel %vm664_vm1, %v671_v6, 0.0 }
  0xc7   : > { %673 = vadd.xlane.f32.xlu0 %v672_v7 }
 0x150   : > { %v674_v11 = vpop.xlane.xlu0 %673 }
 0x151   : > { %v675_v12 = vmul.f32 0.03125, %v674_v11 }
 0x153   : > { %v676_v13 = vadd.f32 1e-07, %v675_v12 }
 0x155   : > { %2280 = vrsqrt.f32 %v676_v13  ;;  %vm679_vm3 = vcmp.eq.f32.partialorder %v676_v13, inf  ;;  %v682_v16 = vand.u32 2147483648, %v676_v13  ;;  %vm681_vm4 = vcmp.eq.f32.partialorder %v676_v13, 0.0 }
 0x162   : > { %v2281_v14 = vpop.eup %2280 }
 0x163   : > { %v678_v15 = vmul.f32 %v2281_v14, %v676_v13 }
 0x165   : > { %v680_v17 = vsel %vm679_vm3, %v676_v13, %v678_v15 }
 0x166   : > { %v683_v18 = vsel %vm681_vm4, %v682_v16, %v680_v17 }
 0x167   : > { %2282 = vrcp.f32 %v683_v18 }
 0x174   : > { %v2283_v19 = vpop.eup %2282 }
 0x175   : > { %v685_v21 = vmul.f32 %v2283_v19, %v670_v5 }
 0x177   : > { %v692_v23 = vmul.f32 %v2043_v20, %v685_v21 }
 0x179   : > { %v699_v24 = vadd.f32 %v2044_v22, %v692_v23 }
 0x17b   : > { %v700_v25 = vpack.c.bf16 %v699_v24, %v699_v24 }
 0x17d   : > { %2127 = vmatmul.mubr.msk.bf16.vlgmr.msra.gmra.mxu0 %vm717_vm5, %v700_v25 }
 0x17e   : > { %2132 = vmatprep.mubr.msk.bf16.mxu0 %vm2351_vm2, %v2350_v9 }
 0x23d   : > { %v2563_v26 = vpop.f32.mrf.mxu0 }
 0x23e   : > { %768 = vrot.lane.b32.xlu0 %v2563_v26, %s2352_s12  ;;  %762 = vrot.lane.b32.xlu1 %v2563_v26, %s2353_s30  ;;  %s2815_s30 = scalar_lea.vmem %s2782_s7, %s2471_s20 }
 0x23f   : > { %v2128_v27 = vpop.f32.mrf.mxu0 }
 0x241   : > { %v758_v28 = vpop.f32.mrf.mxu0 }
 0x242   : > { %765 = vrot.lane.b32.xlu1 %v2563_v26, %s2354_s22 }
 0x243   : > { %v2129_v29 = vpop.f32.mrf.mxu0 }
 0x246   : > { %805 = vrot.lane.b32.xlu1 %v2563_v26, %s2355_s23 }
 0x2b0   : > { %v2569_v30 = vpop.permute.xlu1 %762  ;;  %v2575_v32 = vpop.permute.xlu0 %768 }
 0x2b1   : > { %807 = vrot.lane.b32.xlu1 %v2569_v30, %s2355_s23  ;;  %v779_v44 = vcombine.low %v2569_v30, %v2575_v32 }
 0x2b3   : > { %v786_v48 = vrot.slane %v779_v44, %v2580_v43 }
 0x2b4   : > { %v2572_v31 = vpop.permute.xlu1 %765 }
 0x2b5   : > { %809 = vrot.lane.b32.xlu1 %v2572_v31, %s2355_s23  ;;  %v771_v42 = vcombine.low %v2563_v26, %v2572_v31 }
 0x2b7   : > { %v778_v47 = vrot.slane %v771_v42, %v2580_v43 }
 0x2b8   : > { %v806_v36 = vpop.permute.xlu1 %805 }
 0x2b9   : > { %811 = vrot.lane.b32.xlu1 %v2575_v32, %s2355_s23  ;;  %v787_v52 = vcombine.low %v778_v47, %v786_v48  ;;  %v788_v53 = vcombine.high %v778_v47, %v786_v48  ;;  %s2816_s23 = sld [smem:[#allocation2_spill]] }
 0x2bb   : > { %v795_v57 = vrot.slane %v787_v52, %v2586_v51  ;;  %v802_v58 = vrot.slane %v788_v53, %v2586_v51 }
 0x2bd   : > { %v897_v63 = vcombine.low %v795_v57, %v802_v58  ;;  %v2048_v0 = vcombine.high %v795_v57, %v802_v58 }
 0x2bf   : > { %v904_v6 = vrot.slane %v897_v63, %v2580_v43  ;;  %v912_v7 = vrot.slane %v2048_v0, %v2580_v43  ;;  %p2079_p8 = scmp.ne.s32.totalorder %s2816_s23, 1 }
 0x2c1   : > { %v913_v13 = vcombine.low %v904_v6, %v912_v7  ;;  %v914_v16 = vcombine.high %v904_v6, %v912_v7 }
 0x2c3   : > { %v921_v20 = vrot.slane %v913_v13, %v2586_v51  ;;  %v928_v21 = vrot.slane %v914_v16, %v2586_v51 }
 0x2c5   : > { %v999_v23 = vpack.c.bf16 %v921_v20, %v921_v20  ;;  %v1001_v24 = vpack.c.bf16 %v928_v21, %v928_v21  ;;  %v929_v28 = vcombine.high %v921_v20, %v2350_v9  ;;  %v930_v35 = vcombine.high %v928_v21, %v2350_v9 }
 0x2c7   : > { %v1000_v33 = vpack.c.bf16 %v929_v28, %v929_v28 }
 0x323   : > { %v808_v39 = vpop.permute.xlu1 %807 }
 0x327   : > { %v810_v45 = vpop.permute.xlu1 %809 }
 0x328   : > { %v817_v49 = vcombine.low %v806_v36, %v810_v45  ;;  %v1002_v36 = vpack.c.bf16 %v930_v35, %v930_v35 }
 0x32a   : > { %v824_v55 = vrot.slane %v817_v49, %v2580_v43 }
 0x32b   : > { %v812_v50 = vpop.permute.xlu1 %811 }
 0x32c   : > { %v825_v54 = vcombine.low %v808_v39, %v812_v50 }
 0x32e   : > { %v832_v56 = vrot.slane %v825_v54, %v2580_v43 }
 0x330   : > { %v833_v59 = vcombine.low %v824_v55, %v832_v56  ;;  %v834_v60 = vcombine.high %v824_v55, %v832_v56 }
 0x332   : > { %v841_v61 = vrot.slane %v833_v59, %v2586_v51  ;;  %v848_v62 = vrot.slane %v834_v60, %v2586_v51 }
 0x334   : > { %v931_v2 = vcombine.low %v841_v61, %v848_v62  ;;  %v2049_v3 = vcombine.high %v841_v61, %v848_v62 }
 0x336   : > { %v938_v4 = vrot.slane %v931_v2, %v2580_v43  ;;  %v946_v5 = vrot.slane %v2049_v3, %v2580_v43 }
 0x338   : > { %v947_v8 = vcombine.low %v938_v4, %v946_v5  ;;  %v948_v10 = vcombine.high %v938_v4, %v946_v5 }
 0x33a   : > { %v955_v11 = vrot.slane %v947_v8, %v2586_v51  ;;  %v962_v12 = vrot.slane %v948_v10, %v2586_v51 }
 0x33c   : > { %v1003_v14 = vpack.c.bf16 %v955_v11, %v955_v11  ;;  %v1005_v15 = vpack.c.bf16 %v962_v12, %v962_v12  ;;  %v963_v19 = vcombine.high %v955_v11, %v2350_v9  ;;  %v964_v27 = vcombine.high %v962_v12, %v2350_v9 }
 0x33e   : > { %v1012_v17 = vsel %vm1007_vm6, %v1003_v14, 0  ;;  %v1104_v18 = vsel %vm1007_vm6, %v1005_v15, 0  ;;  %v1004_v22 = vpack.c.bf16 %v963_v19, %v963_v19  ;;  %v1006_v29 = vpack.c.bf16 %v964_v27, %v964_v27 }
 0x33f   : > { %2131 = vmatpush3.bf16.xpose.msra.mxu0 %v1012_v17  ;;  %2143 = vmatpush3.bf16.xpose.msra.mxu1 %v1104_v18 }
 0x340   : > { %2136 = vmatprep.subr.bf16.mxu0 %v2350_v9  ;;  %2154 = vmatprep.subr.bf16.mxu1 %v2350_v9  ;;  %v1058_v25 = vsel %vm1007_vm6, %v1004_v22, 0  ;;  %v1150_v34 = vsel %vm1007_vm6, %v1006_v29, 0 }
 0x346   : > { %2133 = vmatmul.mubr.msk.bf16.vlgmr.msra.gmra.mxu0 %vm1007_vm6, %v999_v23  ;;  %2145 = vmatmul.mubr.msk.bf16.vlgmr.msra.gmra.mxu1 %vm1007_vm6, %v1001_v24 }
 0x347   : > { %2137 = vmatpush3.bf16.xpose.msra.mxu0 %v1058_v25  ;;  %2138 = vmatprep.mubr.msk.bf16.mxu0 %vm2351_vm2, %v2350_v9 }
 0x348   : > { %2148 = vmatprep.subr.bf16.mxu0 %v2350_v9  ;;  %2156 = vmatprep.mubr.msk.bf16.mxu1 %vm2351_vm2, %v2350_v9 }
 0x34e   : > { %2139 = vmatmul.mubr.msk.bf16.vlgmr.msra.gmra.mxu0 %vm1007_vm6, %v1000_v33 }
 0x34f   : > { %2149 = vmatpush3.bf16.xpose.msra.mxu0 %v1150_v34  ;;  %2150 = vmatprep.mubr.msk.bf16.mxu0 %vm2351_vm2, %v2350_v9 }
 0x350   : > { %2160 = vmatprep.subr.bf16.mxu0 %v2350_v9 }
 0x356   : > { %2151 = vmatmul.mubr.msk.bf16.vlgmr.msra.gmra.mxu0 %vm1007_vm6, %v1002_v36 }
 0x357   : > { %2162 = vmatprep.mubr.msk.bf16.mxu0 %vm2351_vm2, %v2350_v9 }
 0x406   : > { %v1048_v37 = vpop.f32.mrf.mxu0  ;;  %v1140_v38 = vpop.f32.mrf.mxu1 }
 0x407   : > { %v1193_v39 = vsel %vm1192_vm7, %v1048_v37, -inf  ;;  %v1199_v45 = vsel %vm1192_vm7, %v1140_v38, -inf }
 0x408   : > { %v2146_v40 = vpop.f32.mrf.mxu1  ;;  %1194 = vmax.xlane.f32.xlu1 %v1193_v39  ;;  %v2134_v41 = vpop.f32.mrf.mxu0 }
 0x40a   : > { %v1051_v42 = vpop.f32.mrf.mxu0  ;;  %v1143_v44 = vpop.f32.mrf.mxu1 }
 0x40c   : > { %v2147_v46 = vpop.f32.mrf.mxu1  ;;  %1200 = vmax.xlane.f32.xlu1 %v1199_v45  ;;  %v2135_v47 = vpop.f32.mrf.mxu0 }
 0x40e   : > { %v1094_v48 = vpop.f32.mrf.mxu0 }
 0x40f   : > { %v1196_v49 = vsel %vm1192_vm7, %v1094_v48, -inf }
 0x410   : > { %1197 = vmax.xlane.f32.xlu0 %v1196_v49  ;;  %v2140_v50 = vpop.f32.mrf.mxu0 }
 0x412   : > { %v1097_v52 = vpop.f32.mrf.mxu0 }
 0x414   : > { %v2141_v53 = vpop.f32.mrf.mxu0 }
 0x416   : > { %v1186_v54 = vpop.f32.mrf.mxu0 }
 0x417   : > { %v1202_v55 = vsel %vm1192_vm7, %v1186_v54, -inf }
 0x418   : > { %1203 = vmax.xlane.f32.xlu0 %v1202_v55  ;;  %v2152_v56 = vpop.f32.mrf.mxu0 }
 0x41a   : > { %v1189_v57 = vpop.f32.mrf.mxu0 }
 0x41c   : > { %v2153_v58 = vpop.f32.mrf.mxu0 }
 0x41d   : > { %851 = vrot.lane.b32.xlu1 %v2563_v26, %s2358_s27 }
 0x491   : > { %v1195_v59 = vpop.xlane.xlu1 %1194 }
 0x492   : > { %v1205_v60 = vsub.f32 %v1048_v37, %v1195_v59 }
 0x494   : > { %v1209_v61 = vmul.f32 1.442695, %v1205_v60 }
 0x495   : > { %v1201_v7 = vpop.xlane.xlu1 %1200 }
 0x496   : > { %2284 = vpow2.f32 %v1209_v61  ;;  %v1207_v8 = vsub.f32 %v1140_v38, %v1201_v7 }
 0x498   : > { %v1213_v11 = vmul.f32 1.442695, %v1207_v8 }
 0x499   : > { %v1198_v62 = vpop.xlane.xlu0 %1197 }
 0x49a   : > { %v1206_v63 = vsub.f32 %v1094_v48, %v1198_v62 }
 0x49c   : > { %v1211_v0 = vmul.f32 1.442695, %v1206_v63 }
 0x49e   : > { %2286 = vpow2.f32 %v1211_v0 }
 0x4a1   : > { %v1204_v26 = vpop.xlane.xlu0 %1203 }
 0x4a2   : > { %v1208_v6 = vsub.f32 %v1186_v54, %v1204_v26 }
 0x4a3   : > { %v2285_v2 = vpop.eup %2284 }
 0x4a4   : > { %v1217_v3 = vsel %vm1192_vm7, %v2285_v2, 0.0  ;;  %v1215_v10 = vmul.f32 1.442695, %v1208_v6 }
 0x4a5   : > { %1218 = vadd.xlane.f32.xlu1 %v1217_v3 }
 0x4a6   : > { %2288 = vpow2.f32 %v1215_v10 }
 0x4a7   : > { %2290 = vpow2.f32 %v1213_v11 }
 0x4ab   : > { %v2287_v4 = vpop.eup %2286 }
 0x4ac   : > { %v1220_v5 = vsel %vm1192_vm7, %v2287_v4, 0.0 }
 0x4ad   : > { %1221 = vadd.xlane.f32.xlu0 %v1220_v5 }
 0x4b3   : > { %v2636_v12 = vpop.eup %2288 }
 0x4b4   : > { %v1226_v13 = vsel %vm1192_vm7, %v2636_v12, 0.0  ;;  %v2640_v14 = vpop.eup %2290 }
 0x4b6   : > { %855 = vrot.lane.b32.xlu1 %v2572_v31, %s2358_s27  ;;  %v1223_v31 = vsel %vm1192_vm7, %v2640_v14, 0.0 }
 0x4ba   : > { %857 = vrot.lane.b32.xlu1 %v2575_v32, %s2358_s27 }
 0x4c3   : > { %853 = vrot.lane.b32.xlu0 %v2569_v30, %s2358_s27  ;;  %v852_v30 = vpop.permute.xlu1 %851  ;;  %s2817_s27 = sld [smem:[#allocation12_spill]] (!%p2079_p8) }
 0x4de   : > { %1227 = vadd.xlane.f32.xlu1 %v1226_v13 }
 0x4e2   : > { %1224 = vadd.xlane.f32.xlu0 %v1223_v31 }
 0x52e   : > { %v1219_v32 = vpop.xlane.xlu1 %1218 }
 0x52f   : > { %2292 = vrcp.f32 %v1219_v32 }
 0x532   : > { %v856_v15 = vpop.permute.xlu1 %855 }
 0x533   : > { %v863_v17 = vcombine.low %v852_v30, %v856_v15 }
 0x535   : > { %v870_v21 = vrot.slane %v863_v17, %v2580_v43 }
 0x536   : > { %v1222_v16 = vpop.xlane.xlu0 %1221  ;;  %v858_v18 = vpop.permute.xlu1 %857 }
 0x537   : > { %2294 = vrcp.f32 %v1222_v16 }
 0x53a   : > { %v854_v19 = vpop.permute.xlu0 %853 }
 0x53b   : > { %v871_v20 = vcombine.low %v854_v19, %v858_v18  ;;  %v2268_v18 = vld [vmem:[%s2813_s26 + $0x8] sm:$0xff]  }
 0x53c   : > { %v2293_v37 = vpop.eup %2292 }
 0x53d   : > { %v878_v22 = vrot.slane %v871_v20, %v2580_v43  ;;  %v1233_v44 = vmul.f32 %v2293_v37, %v2285_v2 }
 0x53f   : > { %v879_v23 = vcombine.low %v870_v21, %v878_v22  ;;  %v880_v24 = vcombine.high %v870_v21, %v878_v22  ;;  %v1237_v52 = vpack.c.bf16 %v1233_v44, %v1233_v44 }
 0x541   : > { %v887_v25 = vrot.slane %v879_v23, %v2586_v51  ;;  %v894_v27 = vrot.slane %v880_v24, %v2586_v51  ;;  %v2269_v24 = vld [vmem:[%s2813_s26] sm:$0xff]  }
 0x543   : > { %v965_v28 = vcombine.low %v887_v25, %v894_v27  ;;  %v2050_v29 = vcombine.high %v887_v25, %v894_v27 }
 0x544   : > { %v2295_v40 = vpop.eup %2294 }
 0x545   : > { %v972_v33 = vrot.slane %v965_v28, %v2580_v43  ;;  %v980_v34 = vrot.slane %v2050_v29, %v2580_v43  ;;  %v1234_v49 = vmul.f32 %v2295_v40, %v2287_v4 }
 0x547   : > { %v981_v35 = vcombine.low %v972_v33, %v980_v34  ;;  %v982_v36 = vcombine.high %v972_v33, %v980_v34  ;;  %v1238_v55 = vpack.c.bf16 %v1234_v49, %v1234_v49 }
 0x549   : > { %v989_v38 = vrot.slane %v981_v35, %v2586_v51  ;;  %v996_v39 = vrot.slane %v982_v36, %v2586_v51 }
 0x54b   : > { %v1241_v41 = vpack.c.bf16 %v989_v38, %v989_v38  ;;  %v997_v42 = vcombine.high %v989_v38, %v2350_v9  ;;  %v998_v45 = vcombine.high %v996_v39, %v2350_v9  ;;  %v1243_v48 = vpack.c.bf16 %v996_v39, %v996_v39 }
 0x54d   : > { %v1251_v46 = vsel %vm1249_vm8, %v1241_v41, 0  ;;  %v1242_v47 = vpack.c.bf16 %v997_v42, %v997_v42  ;;  %v1244_v53 = vpack.c.bf16 %v998_v45, %v998_v45  ;;  %v1343_v54 = vsel %vm1249_vm8, %v1243_v48, 0  ;;  %v2060_v45 = vld [vmem:[%s2814_s21] ss:$0 sm:$0xff] }
 0x54e   : > { %2155 = vmatpush3.bf16.msra.mxu1 %v1251_v46 }
 0x54f   : > { %v1297_v50 = vsel %vm1249_vm8, %v1242_v47, 0  ;;  %2166 = vmatprep.subr.bf16.mxu1 %v2350_v9  ;;  %v1389_v56 = vsel %vm1249_vm8, %v1244_v53, 0 }
 0x550   : > { %2161 = vmatpush3.bf16.msra.mxu0 %v1297_v50 }
 0x551   : > { %2157 = vmatmul.mubr.msk.bf16.vlgmr.msra.gmra.mxu1 %vm1245_vm9, %v1237_v52  ;;  %2172 = vmatprep.subr.bf16.mxu0 %v2350_v9 }
 0x552   : > { %2167 = vmatpush3.bf16.msra.mxu1 %v1343_v54  ;;  %2168 = vmatprep.mubr.msk.bf16.mxu1 %vm2351_vm2, %v2350_v9 }
 0x553   : > { %2163 = vmatmul.mubr.msk.bf16.vlgmr.msra.gmra.mxu0 %vm1245_vm9, %v1238_v55  ;;  %2178 = vmatprep.subr.bf16.mxu1 %v2350_v9 }
 0x554   : > { %2173 = vmatpush3.bf16.msra.mxu0 %v1389_v56  ;;  %2174 = vmatprep.mubr.msk.bf16.mxu0 %vm2351_vm2, %v2350_v9 }
 0x555   : > { %2186 = vmatprep.subr.bf16.mxu0 %v2350_v9 }
 0x567   : > { %v1228_v57 = vpop.xlane.xlu1 %1227 }
 0x568   : > { %2296 = vrcp.f32 %v1228_v57 }
 0x56b   : > { %v1225_v58 = vpop.xlane.xlu0 %1224 }
 0x56c   : > { %2298 = vrcp.f32 %v1225_v58 }
 0x575   : > { %v2297_v59 = vpop.eup %2296 }
 0x576   : > { %v1236_v60 = vmul.f32 %v2297_v59, %v2636_v12  ;;  %v2270_v59 = vld [vmem:[%s2510_s3 + $0x8] sm:$0xff]  }
 0x578   : > { %v1240_v61 = vpack.c.bf16 %v1236_v60, %v1236_v60  ;;  %v2271_v60 = vld [vmem:[%s2510_s3] sm:$0xff]  }
 0x579   : > { %v2299_v62 = vpop.eup %2298 }
 0x57a   : > { %2175 = vmatmul.mubr.msk.bf16.vlgmr.msra.gmra.mxu0 %vm1245_vm9, %v1240_v61  ;;  %v1235_v63 = vmul.f32 %v2299_v62, %v2640_v14 }
 0x57b   : > { %2190 = vmatprep.mubr.msk.bf16.mxu0 %vm2351_vm2, %v2350_v9  ;;  %2187 = vmatpush3.bf16.msra.mxu0 %v2270_v59 }
 0x57c   : > { %v1239_v0 = vpack.c.bf16 %v1235_v63, %v1235_v63  ;;  %2188 = vmatprep.subr.bf16.mxu0 %v2350_v9 }
 0x57e   : > { %2169 = vmatmul.mubr.msk.bf16.vlgmr.msra.gmra.mxu1 %vm1245_vm9, %v1239_v0 }
 0x57f   : > { %2182 = vmatprep.mubr.msk.bf16.mxu1 %vm2351_vm2, %v2350_v9  ;;  %2179 = vmatpush3.bf16.msra.mxu1 %v2268_v18 }
 0x580   : > { %2180 = vmatprep.subr.bf16.mxu1 %v2350_v9  ;;  %2189 = vmatpush3.bf16.msra.mxu0 %v2271_v60 }
 0x583   : > { %2181 = vmatpush3.bf16.msra.mxu1 %v2269_v24 }
 0x584   : > { %2194 = vmatprep.subr.bf16.mxu1 %v2350_v9 }
 0x611   : > { %v1287_v2 = vpop.f32.mrf.mxu1 }
 0x613   : > { %v2158_v3 = vpop.f32.mrf.mxu1  ;;  %v1333_v4 = vpop.f32.mrf.mxu0 }
 0x615   : > { %v1290_v5 = vpop.f32.mrf.mxu1  ;;  %v2164_v26 = vpop.f32.mrf.mxu0 }
 0x616   : > { %v2064_v26 = vld [vmem:[%s629_s19] ss:$0 sm:$0xff] }
 0x617   : > { %v2159_v6 = vpop.f32.mrf.mxu1  ;;  %v1336_v7 = vpop.f32.mrf.mxu0 }
 0x618   : > { %v2065_v7 = vld [vmem:[%s2815_s30] ss:$0 sm:$0xff] }
 0x619   : > { %v2165_v8 = vpop.f32.mrf.mxu0 }
 0x63a   : > { %v1425_v10 = vpop.f32.mrf.mxu0 }
 0x63b   : > { %v1439_v12 = vcombine.low %v1333_v4, %v1425_v10 }
 0x63c   : > { %v2176_v11 = vpop.f32.mrf.mxu0 }
 0x63d   : > { %v1446_v15 = vrot.slane %v1439_v12, %v2580_v43  ;;  %v2272_v12 = vld [vmem:[%s2520_s25 + $0x38] sm:$0xff]  }
 0x63e   : > { %v1379_v13 = vpop.f32.mrf.mxu1  ;;  %v1428_v14 = vpop.f32.mrf.mxu0 }
 0x63f   : > { %v1431_v31 = vcombine.low %v1287_v2, %v1379_v13  ;;  %v2273_v13 = vld [vmem:[%s2520_s25 + $0x30] sm:$0xff]   ;;  %v2274_v14 = vld [vmem:[%s2520_s25 + $0x28] sm:$0xff]  }
 0x640   : > { %v2170_v30 = vpop.f32.mrf.mxu1  ;;  %v2177_v32 = vpop.f32.mrf.mxu0 }
 0x641   : > { %v1438_v16 = vrot.slane %v1431_v31, %v2580_v43  ;;  %v2275_v31 = vld [vmem:[%s2520_s25 + $0x20] sm:$0xff]   ;;  %v2276_v30 = vld [vmem:[%s2520_s25 + $0x18] sm:$0xff]   ;;  %v2277_v32 = vld [vmem:[%s2520_s25 + $0x10] sm:$0xff]  }
 0x642   : > { %v1382_v17 = vpop.f32.mrf.mxu1 }
 0x643   : > { %v1447_v19 = vcombine.low %v1438_v16, %v1446_v15  ;;  %v1448_v20 = vcombine.high %v1438_v16, %v1446_v15  ;;  %v2278_v15 = vld [vmem:[%s2520_s25 + $0x8] sm:$0xff]   ;;  %v2279_v16 = vld [vmem:[%s2520_s25] sm:$0xff]  }
 0x644   : > { %v2171_v21 = vpop.f32.mrf.mxu1  ;;  %v2066_v17 = vld [vmem:[%s640_s4] ss:$0 sm:$0xff] }
 0x645   : > { %v1455_v22 = vrot.slane %v1447_v19, %v2586_v51  ;;  %v1462_v23 = vrot.slane %v1448_v20, %v2586_v51 }
 0x647   : > { %v1465_v25 = vcombine.low %v1455_v22, %v1462_v23  ;;  %v2059_v27 = vcombine.high %v1455_v22, %v1462_v23 }
 0x649   : > { %v1472_v28 = vrot.slane %v1465_v25, %v2580_v43  ;;  %v1480_v29 = vrot.slane %v2059_v27, %v2580_v43 }
 0x64b   : > { %v1482_v33 = vcombine.high %v1472_v28, %v1480_v29  ;;  %v1481_v34 = vcombine.low %v1472_v28, %v1480_v29 }
 0x64d   : > { %v1496_v35 = vrot.slane %v1482_v33, %v2586_v51  ;;  %v1489_v36 = vrot.slane %v1481_v34, %v2586_v51 }
 0x64f   : > { %1504 = vrot.lane.b32.xlu1 %v1496_v35, %s2359_s28  ;;  %v1497_v37 = vcombine.high %v1489_v36, %v2350_v9  ;;  %v1498_v38 = vcombine.high %v1496_v35, %v2350_v9 }
 0x651   : > { %1500 = vrot.lane.b32.xlu0 %v1497_v37, %s2360_s16  ;;  %s2818_s16 = sld [smem:[#allocation13_spill]] (!%p2079_p8) }
 0x655   : > { %1508 = vrot.lane.b32.xlu0 %v1498_v38, %s2361_s0 }
 0x6c1   : > { %v1505_v40 = vpop.permute.xlu1 %1504 }
 0x6c3   : > { %v1501_v43 = vpop.permute.xlu0 %1500 }
 0x6c4   : > { %v1511_v39 = vsel %vm1007_vm6, %v1489_v36, %v1501_v43  ;;  %v2070_v36 = vld [vmem:[%s648_s18] ss:$0 sm:$0xff] }
 0x6c5   : > { %v1513_v41 = vsel %vm1512_vm10, %v1511_v39, %v1505_v40 }
 0x6c7   : > { %v1509_v42 = vpop.permute.xlu0 %1508 }
 0x6c8   : > { %v1515_v51 = vsel %vm1514_vm11, %v1513_v41, %v1509_v42 }
 0x6c9   : > { %v1516_v44 = vpack.c.bf16 %v1515_v51, %v1515_v51 }
 0x6cb   : > { %2183 = vmatmul.mubr.msk.bf16.vlgmr.msra.gmra.mxu1 %vm717_vm5, %v1516_v44 }
 0x6cc   : > { %2210 = vmatprep.mubr.msk.bf16.mxu1 %vm2351_vm2, %v2350_v9  ;;  %2195 = vmatpush3.bf16.msra.mxu1 %v2272_v12 }
 0x6cd   : > { %2196 = vmatprep.subr.bf16.mxu1 %v2350_v9 }
 0x6d0   : > { %2197 = vmatpush3.bf16.msra.mxu1 %v2273_v13 }
 0x6d1   : > { %2198 = vmatprep.subr.bf16.mxu1 %v2350_v9 }
 0x6d4   : > { %2199 = vmatpush3.bf16.msra.mxu1 %v2274_v14 }
 0x6d5   : > { %2200 = vmatprep.subr.bf16.mxu1 %v2350_v9 }
 0x6d8   : > { %2201 = vmatpush3.bf16.msra.mxu1 %v2275_v31 }
 0x6d9   : > { %2202 = vmatprep.subr.bf16.mxu1 %v2350_v9 }
 0x6dc   : > { %2203 = vmatpush3.bf16.msra.mxu1 %v2276_v30 }
 0x6dd   : > { %2204 = vmatprep.subr.bf16.mxu1 %v2350_v9 }
 0x6e0   : > { %2205 = vmatpush3.bf16.msra.mxu1 %v2277_v32 }
 0x6e1   : > { %2206 = vmatprep.subr.bf16.mxu1 %v2350_v9 }
 0x6e4   : > { %2207 = vmatpush3.bf16.msra.mxu1 %v2278_v15 }
 0x6e5   : > { %2208 = vmatprep.subr.bf16.mxu1 %v2350_v9 }
 0x6e8   : > { %2209 = vmatpush3.bf16.msra.mxu1 %v2279_v16 }
 0x78b   : > { %v1577_v46 = vpop.f32.mrf.mxu1 }
 0x78c   : > { %v1578_v47 = vadd.f32 %v2060_v45, %v1577_v46 }
 0x78d   : > { %v2184_v48 = vpop.f32.mrf.mxu1 }
 0x78e   : > { %v2700_v49 = vadd.f32 %v1578_v47, %v2534_v1 }
 0x78f   : > { %v1580_v50 = vpop.f32.mrf.mxu1 }
 0x790   : > { %v1586_v52 = vsel %vm664_vm1, %v2700_v49, 0.0 }
 0x791   : > { %1587 = vadd.xlane.f32.xlu1 %v1586_v52  ;;  %v2185_v53 = vpop.f32.mrf.mxu1 }
 0x81a   : > { %v1588_v54 = vpop.xlane.xlu1 %1587 }
 0x81b   : > { %v1589_v55 = vmul.f32 0.03125, %v1588_v54 }
 0x81d   : > { %v1590_v56 = vsub.f32 %v2700_v49, %v1589_v55 }
 0x81f   : > { %v1591_v57 = vmul.f32 %v1590_v56, %v1590_v56 }
 0x821   : > { %v1592_v58 = vsel %vm664_vm1, %v1591_v57, 0.0 }
 0x822   : > { %1593 = vadd.xlane.f32.xlu0 %v1592_v58 }
 0x8ab   : > { %v1594_v1 = vpop.xlane.xlu0 %1593 }
 0x8ac   : > { %v1595_v61 = vmul.f32 0.03125, %v1594_v1 }
 0x8ae   : > { %v1596_v62 = vadd.f32 1e-07, %v1595_v61 }
 0x8b0   : > { %2300 = vrsqrt.f32 %v1596_v62  ;;  %vm1599_vm12 = vcmp.eq.f32.partialorder %v1596_v62, inf  ;;  %v1602_v2 = vand.u32 2147483648, %v1596_v62  ;;  %vm1601_vm13 = vcmp.eq.f32.partialorder %v1596_v62, 0.0 }
 0x8bd   : > { %v2301_v63 = vpop.eup %2300 }
 0x8be   : > { %v1598_v0 = vmul.f32 %v2301_v63, %v1596_v62 }
 0x8c0   : > { %v1600_v3 = vsel %vm1599_vm12, %v1596_v62, %v1598_v0 }
 0x8c1   : > { %v1603_v4 = vsel %vm1601_vm13, %v1602_v2, %v1600_v3 }
 0x8c2   : > { %2302 = vrcp.f32 %v1603_v4 }
 0x8cf   : > { %v2303_v5 = vpop.eup %2302 }
 0x8d0   : > { %v1605_v6 = vmul.f32 %v2303_v5, %v1590_v56 }
 0x8d2   : > { %v1612_v8 = vmul.f32 %v2064_v26, %v1605_v6 }
 0x8d4   : > { %v1619_v10 = vadd.f32 %v2065_v7, %v1612_v8 }
 0x8d6   : > { %v1620_v11 = vpack.c.bf16 %v1619_v10, %v1619_v10 }
 0x8d8   : > { %2191 = vmatmul.mubr.msk.bf16.vlgmr.msra.gmra.mxu0 %vm717_vm5, %v1620_v11 }
 0x998   : > { %v1681_v18 = vpop.f32.mrf.mxu0 }
 0x999   : > { %v1682_v19 = vadd.f32 %v2066_v17, %v1681_v18 }
 0x99a   : > { %v2192_v20 = vpop.f32.mrf.mxu0 }
 0x99b   : > { %v1688_v21 = vmul.f32 0.044715, %v1682_v19  ;;  %v1687_v29 = vmul.f32 0.5, %v1682_v19 }
 0x99c   : > { %v1684_v22 = vpop.f32.mrf.mxu0 }
 0x99d   : > { %v1689_v23 = vmul.f32 %v1688_v21, %v1682_v19 }
 0x99e   : > { %v2193_v24 = vpop.f32.mrf.mxu0 }
 0x99f   : > { %v1690_v25 = vmul.f32 %v1689_v23, %v1682_v19 }
 0x9a1   : > { %v1691_v27 = vadd.f32 %v1690_v25, %v1682_v19 }
 0x9a3   : > { %v1692_v28 = vmul.f32 0.7978846, %v1691_v27 }
 0x9a5   : > { %2304 = vtanh.f32 %v1692_v28 }
 0x9b2   : > { %v2305_v9 = vpop.eup %2304 }
 0x9b3   : > { %v1694_v33 = vadd.f32 1.0, %v2305_v9 }
 0x9b5   : > { %v1695_v34 = vmul.f32 %v1694_v33, %v1687_v29 }
 0x9b7   : > { %v1696_v35 = vpack.c.bf16 %v1695_v34, %v1695_v34 }
 0x9b9   : > { %2211 = vmatmul.mubr.bf16.vlgmr.msra.gmra.mxu1 %v1696_v35 }
 0xa79   : > { %v1802_v37 = vpop.f32.mrf.mxu1 }
 0xa7a   : > { %v1803_v38 = vadd.f32 %v2070_v36, %v1802_v37 }
 0xa7b   : > { %v2212_v43 = vpop.f32.mrf.mxu1  ;;  %1813 = sbr.rel (%p2079_p8) target bundleno = 3021 (0xbcd), region = 84 }
 0xa7c   : > { %v1808_v39 = vadd.f32 %v1803_v38, %v2700_v49 }
 0xa7d   : > { %v1805_v40 = vpop.f32.mrf.mxu1 }
 0xa7e   : > { %1809 = vst.msk [vmem:[%s2529_s15] sm:$0xf] %vm664_vm1, %v1808_v39 }
 0xa7f   : > { %v2213_v41 = vpop.f32.mrf.mxu1 }
 0xa80   : > { %v2080_v59 = vld [vmem:[%s2817_s27] ss:$0 sm:$0xff] }
 0xa81   : > { %v2081_v1 = vld [vmem:[%s2818_s16] ss:$0 sm:$0xff] }
 0xa85   : > { %v1814_v42 = vld [vmem:[%s2529_s15] sm:$0xf] }
 0xa86   : > { %v1817_v51 = vsel %vm664_vm1, %v1814_v42, 0.0 }
 0xa87   : > { %1818 = vadd.xlane.f32.xlu0 %v1817_v51 }
 0xb10   : > { %v1819_v44 = vpop.xlane.xlu0 %1818 }
 0xb11   : > { %v1820_v45 = vmul.f32 0.03125, %v1819_v44 }
 0xb13   : > { %v1821_v46 = vsub.f32 %v1814_v42, %v1820_v45 }
 0xb15   : > { %v1822_v47 = vmul.f32 %v1821_v46, %v1821_v46 }
 0xb17   : > { %v1823_v48 = vsel %vm664_vm1, %v1822_v47, 0.0 }
 0xb18   : > { %1824 = vadd.xlane.f32.xlu0 %v1823_v48 }
 0xba1   : > { %v1825_v49 = vpop.xlane.xlu0 %1824 }
 0xba2   : > { %v1826_v50 = vmul.f32 0.03125, %v1825_v49 }
 0xba4   : > { %v1827_v52 = vadd.f32 1e-07, %v1826_v50 }
 0xba6   : > { %2306 = vrsqrt.f32 %v1827_v52  ;;  %vm1830_vm14 = vcmp.eq.f32.partialorder %v1827_v52, inf  ;;  %v1833_v55 = vand.u32 2147483648, %v1827_v52  ;;  %vm1832_vm15 = vcmp.eq.f32.partialorder %v1827_v52, 0.0 }
 0xbb3   : > { %v2307_v53 = vpop.eup %2306 }
 0xbb4   : > { %v1829_v54 = vmul.f32 %v2307_v53, %v1827_v52 }
 0xbb6   : > { %v1831_v56 = vsel %vm1830_vm14, %v1827_v52, %v1829_v54 }
 0xbb7   : > { %v1834_v57 = vsel %vm1832_vm15, %v1833_v55, %v1831_v56 }
 0xbb8   : > { %2308 = vrcp.f32 %v1834_v57 }
 0xbc5   : > { %v2309_v58 = vpop.eup %2308 }
 0xbc6   : > { %v1836_v60 = vmul.f32 %v2309_v58, %v1821_v46 }
 0xbc8   : > { %v1843_v61 = vmul.f32 %v2080_v59, %v1836_v60 }
 0xbca   : > { %v1850_v62 = vadd.f32 %v2081_v1, %v1843_v61 }
 0xbcc   : > { %1851 = vst.msk [vmem:[%s2529_s15] sm:$0xf] %vm664_vm1, %v1850_v62 }
 0xbcd PF: > { %s2819_s0 = sld [smem:[#allocation5_spill]] }
 0xbce   : > { %s2820_s29 = sld [smem:[#allocation3_spill]] }
 0xbcf   : > { %s2821_s30 = sld [smem:[#allocation4_spill]] }
 0xbd0   : > { %s2822_s15 = sld [smem:[#allocation6_spill]] }
 0xbd1   : > { %s2823_s16 = sld [smem:[#allocation7_spill]] }
 0xbd3   : > { %s24_s17 = sadd.s32 1, %s2819_s0  }
 0xbd4   : > { %p21_p9 = scmp.ge.s32.totalorder %s24_s17, 6  }
 0xbd6   :  { %23 = sbr.rel (!%p21_p9) target bundleno = 6 (0x6), region = 147 }

// kernel: vit_forward.7
= control target key start
LH: loop header
LB: loop body
LE: loop exit
PB: predicated region body
PF: predicated region fallthrough
CT: control target
= control target key end

     0   :  { %s1084_s12 = smov 0   ;;  %s1434_s0 = inlined_call_operand.vmem [shape: bf16[2,9,9,32], index: 0, kind: input, shape index: {}]   ;;  %s1435_s1 = inlined_call_operand.vmem [shape: bf16[128,128], index: 1, kind: input, shape index: {}]   ;;  %s1436_s2 = inlined_call_operand.vmem [shape: f32[1,128], index: 2, kind: input, shape index: {}]   ;;  %s1437_s3 = inlined_call_operand.vmem [shape: f32[2,64,128], index: 3, kind: output, shape index: {}]  }
   0x1 LB: > { %s889_s13 = sadd.s32 4294967295, %s1059_s12   ;;  %p893_p0 = scmp.ge.s32.totalorder %s1059_s12, 1  ;;  %s1059_s12 = sphi %s1084_s12, %s13_s12  }
   0x2   : > { %p137_p1 = scmp.lt.s32.totalorder %s1059_s12, 3 }
   0x4   : > { %p138_p2 = pnand %p893_p0, %p137_p1 }
   0x5   : > { %p161_p3 = scmp.lt.s32.totalorder (!%p138_p2), %s889_s13, 1  ;;  %s1061_s24 = smov (!%p138_p2), 64  }
   0x6   : > { %141 = sbr.rel (%p138_p2) target bundleno = 419 (0x1a3), region = 32  ;;  %s1062_s4 = smov (!%p138_p2), 32  }
   0x7   : > { %s1063_s9 = smov (!%p138_p2), 96  }
   0xb   : > { %s1453_s13 = smov (!%p161_p3, %s889_s13), 1  ;;  %v1009_v0 = vld [vmem:[%s1435_s1 + $0x38] sm:$0xff]   ;;  %v1010_v1 = vld [vmem:[%s1435_s1 + $0x30] sm:$0xff]   ;;  %v1011_v2 = vld [vmem:[%s1435_s1 + $0x28] sm:$0xff]   ;;  %vm188_vm0 = vsmask.f32 3328 }
   0xc   : > { %s993_s18 = smul.u32 72, %s1453_s13  ;;  %953 = vmatprep.subr.bf16.mxu0 %v1009_v0  ;;  %977 = vmatprep.subr.bf16.mxu1 %v1009_v0  ;;  %v1012_v19 = vld [vmem:[%s1435_s1 + $0x20] sm:$0xff]   ;;  %vm189_vm1 = vsmask.f32 7440  ;;  %v1013_v30 = vld [vmem:[%s1435_s1 + $0x18] sm:$0xff]   ;;  %vm520_vm3 = vcmask 261120  }
   0xd   : > { %954 = vmatpush3.bf16.msra.mxu0 %v1009_v0  ;;  %985 = vmatpush3.bf16.msra.mxu1 %v1009_v0  ;;  %vm1181_vm2 = vmor %vm188_vm0, %vm189_vm1  ;;  %vm542_vm4 = vcmask 785408   ;;  %vm533_vm5 = vcmask 523264   ;;  %s940_s14 = sshll.u32 %s1453_s13, 6 }
   0xe   : > { %s1104_s21 = scalar_lea.vmem %s1434_s0, %s993_s18  ;;  %955 = vmatprep.subr.bf16.mxu0 %v1010_v1  ;;  %978 = vmatprep.subr.bf16.mxu1 %v1010_v1  ;;  %s1349_s16 = scalar_lea.vmem %s1437_s3, %s940_s14 }
   0xf   : > { %v901_v3 = vld [vmem:[%s1104_s21 + $0x28] sm:$0xf]  ;;  %v902_v4 = vld [vmem:[%s1104_s21 + $0x30] sm:$0xf]  ;;  %v903_v24 = vld [vmem:[%s1104_s21 + $0x38] sm:$0xf] }
  0x10   : > { %v897_v5 = vld [vmem:[%s1104_s21 + $0x8] sm:$0xf]  ;;  %v391_v6 = vshrl.u32 %v902_v4, 16  ;;  %v394_v7 = vshll.u32 %v902_v4, 16  ;;  %v923_v8 = vcombine.low %v901_v3, %v902_v4  ;;  %v377_v9 = vshrl.u32 %v901_v3, 16 }
  0x11   : > { %v898_v10 = vld [vmem:[%s1104_s21 + $0x10] sm:$0xf]  ;;  %v380_v11 = vshll.u32 %v901_v3, 16  ;;  %956 = vmatpush3.bf16.msra.mxu0 %v1010_v1  ;;  %986 = vmatpush3.bf16.msra.mxu1 %v1010_v1  ;;  %v321_v18 = vshrl.u32 %v897_v5, 16  ;;  %v324_v23 = vshll.u32 %v897_v5, 16  ;;  %v405_v28 = vshrl.u32 %v903_v24, 16 }
  0x12   : > { %v335_v12 = vshrl.u32 %v898_v10, 16  ;;  %v338_v13 = vshll.u32 %v898_v10, 16  ;;  %v921_v14 = vcombine.low %v897_v5, %v898_v10  ;;  %v393_v15 = vrot.slane %v391_v6, 4  ;;  %496 = vrot.lane.b32.xlu1 %v923_v8, %s1061_s24  ;;  %957 = vmatprep.subr.bf16.mxu0 %v1011_v2  ;;  %v904_v27 = vld [vmem:[%s1104_s21 + $0x40] sm:$0xf] }
  0x13   : > { %v396_v16 = vrot.slane %v394_v7, 5  ;;  %v379_v17 = vrot.slane %v377_v9, 4  ;;  %v382_v20 = vrot.slane %v380_v11, 5  ;;  %979 = vmatprep.subr.bf16.mxu1 %v1011_v2  ;;  %v323_v26 = vrot.slane %v321_v18, 4  ;;  %v899_v35 = vld [vmem:[%s1104_s21 + $0x18] sm:$0xf] }
  0x14   : > { %v337_v21 = vrot.slane %v335_v12, 4  ;;  %v340_v22 = vrot.slane %v338_v13, 5  ;;  %492 = vrot.lane.b32.xlu0 %v921_v14, %s1061_s24  ;;  %v408_v29 = vshll.u32 %v903_v24, 16  ;;  %v326_v33 = vrot.slane %v324_v23, 5  ;;  %v900_v36 = vld [vmem:[%s1104_s21 + $0x20] sm:$0xf] }
  0x15   : > { %v397_v25 = vor.u32 %v396_v16, %v393_v15  ;;  %v383_v31 = vor.u32 %v382_v20, %v379_v17  ;;  %v419_v34 = vshrl.u32 %v904_v27, 16  ;;  %958 = vmatpush3.bf16.msra.mxu0 %v1011_v2  ;;  %987 = vmatpush3.bf16.msra.mxu1 %v1011_v2  ;;  %v1127_v38 = vrot.slane %v405_v28, 4  ;;  %v1132_v41 = vld [vmem:[%s1104_s21 + $0x10] sm:$0xf]  ;;  %v1141_v46 = vld [vmem:[%s1104_s21 + $0x18] sm:$0xf] }
  0x16   : > { %v341_v32 = vor.u32 %v340_v22, %v337_v21  ;;  %v1129_v39 = vrot.slane %v408_v29, 5  ;;  %v422_v40 = vshll.u32 %v904_v27, 16  ;;  %959 = vmatprep.subr.bf16.mxu0 %v1012_v19  ;;  %980 = vmatprep.subr.bf16.mxu1 %v1012_v19  ;;  %v327_v44 = vor.u32 %v326_v33, %v323_v26  ;;  %v182_v51 = vld [vmem:[%s1104_s21 + $0x14] sm:$0x1]  ;;  %v183_v56 = vld [vmem:[%s1104_s21 + $0x1c] sm:$0x1] }
  0x17   : > { %v1125_v37 = vrot.slane %v397_v25, 4  ;;  %v1134_v42 = vrot.slane %v383_v31, 4  ;;  %v1138_v45 = vrot.slane %v419_v34, 4  ;;  %v924_v48 = vcombine.low %v903_v24, %v904_v27  ;;  %v1157_v61 = vld [vmem:[%s1104_s21] sm:$0xf]  ;;  %v1016_v18 = vld [vmem:[%s1435_s1 + $0x10] sm:$0xff]  }
  0x18   : > { %v1136_v43 = vrot.slane %v341_v32, 4  ;;  %v1143_v47 = vrot.slane %v422_v40, 5  ;;  %v349_v49 = vshrl.u32 %v899_v35, 16  ;;  %v352_v50 = vshll.u32 %v899_v35, 16  ;;  %v180_v2 = vld [vmem:[%s1104_s21 + $0x4] sm:$0x1] }
  0x19   : > { %v1146_v52 = vrot.slane %v327_v44, 4  ;;  %v363_v53 = vshrl.u32 %v900_v36, 16  ;;  %v366_v54 = vshll.u32 %v900_v36, 16  ;;  %v922_v55 = vcombine.low %v899_v35, %v900_v36  ;;  %960 = vmatpush3.bf16.msra.mxu0 %v1012_v19  ;;  %988 = vmatpush3.bf16.msra.mxu1 %v1012_v19  ;;  %v1168_v7 = vld [vmem:[%s1104_s21 + $0x8] sm:$0xf] }
  0x1a   : > { %498 = vrot.lane.b32.xlu1 %v924_v48, %s1061_s24  ;;  %v1150_v57 = vrot.slane %v349_v49, 4  ;;  %v1152_v58 = vrot.slane %v352_v50, 5  ;;  %v220_v59 = vshrl.u32 %v1132_v41, 16  ;;  %v223_v60 = vshll.u32 %v1132_v41, 16  ;;  %961 = vmatprep.subr.bf16.mxu0 %v1013_v30  ;;  %v181_v10 = vld [vmem:[%s1104_s21 + $0xc] sm:$0x1] }
  0x1b   : > { %v1159_v62 = vrot.slane %v363_v53, 4  ;;  %v1161_v63 = vrot.slane %v366_v54, 5  ;;  %494 = vrot.lane.b32.xlu0 %v922_v55, %s1061_s24  ;;  %v229_v0 = vshll.u32 %v182_v51, 16  ;;  %v234_v1 = vshrl.u32 %v1141_v46, 16  ;;  %981 = vmatprep.subr.bf16.mxu1 %v1013_v30  ;;  %v1174_v17 = vld [vmem:[%s1104_s21 + $0x30] sm:$0xf] }
  0x1c   : > { %v222_v3 = vrot.slane %v220_v59, 4  ;;  %v225_v4 = vrot.slane %v223_v60, 5  ;;  %v237_v5 = vshll.u32 %v1141_v46, 16  ;;  %v243_v6 = vshll.u32 %v183_v56, 16  ;;  %v186_v28 = vld [vmem:[%s1104_s21 + $0x34] sm:$0x1] }
  0x1d   : > { %v231_v8 = vrot.slane %v229_v0, 5  ;;  %v236_v9 = vrot.slane %v234_v1, 4  ;;  %v192_v11 = vshrl.u32 %v1157_v61, 16  ;;  %v195_v12 = vshll.u32 %v1157_v61, 16  ;;  %962 = vmatpush3.bf16.msra.mxu0 %v1013_v30  ;;  %989 = vmatpush3.bf16.msra.mxu1 %v1013_v30  ;;  %v1189_v32 = vld [vmem:[%s1104_s21 + $0x38] sm:$0xf] }
  0x1e   : > { %v226_v13 = vor.u32 %v225_v4, %v222_v3  ;;  %v239_v14 = vrot.slane %v237_v5, 5  ;;  %v245_v15 = vrot.slane %v243_v6, 5  ;;  %v201_v16 = vshll.u32 %v180_v2, 16  ;;  %963 = vmatprep.subr.bf16.mxu0 %v1016_v18  ;;  %982 = vmatprep.subr.bf16.mxu1 %v1016_v18  ;;  %v187_v40 = vld [vmem:[%s1104_s21 + $0x3c] sm:$0x1] }
  0x1f   : > { %v194_v20 = vrot.slane %v192_v11, 4  ;;  %v197_v21 = vrot.slane %v195_v12, 5  ;;  %v206_v22 = vshrl.u32 %v1168_v7, 16  ;;  %v209_v23 = vshll.u32 %v1168_v7, 16  ;;  %v1197_v53 = vld [vmem:[%s1104_s21 + $0x20] sm:$0xf] }
  0x20   : > { %v227_v24 = vrot.slane %v226_v13, 4  ;;  %v240_v25 = vor.u32 %v239_v14, %v236_v9  ;;  %v203_v26 = vrot.slane %v201_v16, 5  ;;  %v215_v27 = vshll.u32 %v181_v10, 16  ;;  %v184_v60 = vld [vmem:[%s1104_s21 + $0x24] sm:$0x1]  ;;  %v1019_v16 = vld [vmem:[%s1435_s1 + $0x8] sm:$0xff]  }
  0x21   : > { %v198_v29 = vor.u32 %v197_v21, %v194_v20  ;;  %v208_v30 = vrot.slane %v206_v22, 4  ;;  %v211_v31 = vrot.slane %v209_v23, 5  ;;  %v276_v33 = vshrl.u32 %v1174_v17, 16  ;;  %964 = vmatpush3.bf16.msra.mxu0 %v1016_v18  ;;  %990 = vmatpush3.bf16.msra.mxu1 %v1016_v18  ;;  %v1207_v4 = vld [vmem:[%s1104_s21 + $0x28] sm:$0xf] }
  0x22   : > { %v232_v34 = vsel %vm1181_vm2, %v227_v24, %v231_v8  ;;  %v241_v35 = vrot.slane %v240_v25, 4  ;;  %v217_v36 = vrot.slane %v215_v27, 5  ;;  %v279_v44 = vshll.u32 %v1174_v17, 16  ;;  %v185_v10 = vld [vmem:[%s1104_s21 + $0x2c] sm:$0x1]  ;;  %965 = vmatprep.subr.bf16.mxu0 %v1019_v16  ;;  %983 = vmatprep.subr.bf16.mxu1 %v1019_v16 }
  0x23   : > { %v199_v48 = vrot.slane %v198_v29, 4  ;;  %v212_v49 = vor.u32 %v211_v31, %v208_v30  ;;  %v278_v50 = vrot.slane %v276_v33, 4  ;;  %v285_v51 = vshll.u32 %v186_v28, 16  ;;  %v910_v23 = vld [vmem:[%s1104_s21 + $0x34] sm:$0x1] }
  0x24   : > { %v246_v54 = vsel %vm1181_vm2, %v241_v35, %v245_v15  ;;  %v281_v55 = vrot.slane %v279_v44, 5  ;;  %v290_v56 = vshrl.u32 %v1189_v32, 16  ;;  %v293_v59 = vshll.u32 %v1189_v32, 16  ;;  %v909_v15 = vld [vmem:[%s1104_s21 + $0x2c] sm:$0x1] }
  0x25   : > { %v918_v0 = vcombine.low %v232_v34, %v246_v54  ;;  %v204_v1 = vsel %vm1181_vm2, %v199_v48, %v203_v26  ;;  %v213_v2 = vrot.slane %v212_v49, 4  ;;  %v287_v3 = vrot.slane %v285_v51, 5  ;;  %v905_v24 = vld [vmem:[%s1104_s21 + $0xc] sm:$0x1]  ;;  %v906_v29 = vld [vmem:[%s1104_s21 + $0x14] sm:$0x1]  ;;  %966 = vmatpush3.bf16.msra.mxu0 %v1019_v16  ;;  %991 = vmatpush3.bf16.msra.mxu1 %v1019_v16 }
  0x26   : > { %v282_v5 = vor.u32 %v281_v55, %v278_v50  ;;  %v292_v6 = vrot.slane %v290_v56, 4  ;;  %v295_v8 = vrot.slane %v293_v59, 5  ;;  %v299_v9 = vshll.u32 %v187_v40, 16  ;;  %v911_v35 = vld [vmem:[%s1104_s21 + $0x3c] sm:$0x1]  ;;  %v1020_v49 = vld [vmem:[%s1435_s1] sm:$0xff]  }
  0x27   : > { %466 = vrot.lane.b32.xlu1 %v918_v0, %s1062_s4  ;;  %v218_v11 = vsel %vm1181_vm2, %v213_v2, %v217_v36  ;;  %v248_v12 = vshrl.u32 %v1197_v53, 16  ;;  %v251_v13 = vshll.u32 %v1197_v53, 16  ;;  %v257_v14 = vshll.u32 %v184_v60, 16  ;;  %967 = vmatprep.subr.bf16.mxu0 %v1020_v49 }
  0x28   : > { %v917_v18 = vcombine.low %v204_v1, %v218_v11  ;;  %v283_v20 = vrot.slane %v282_v5, 4  ;;  %v296_v21 = vor.u32 %v295_v8, %v292_v6  ;;  %v301_v22 = vrot.slane %v299_v9, 5  ;;  %984 = vmatprep.subr.bf16.mxu1 %v1020_v49  ;;  %v912_v5 = vld [vmem:[%s1104_s21 + $0x44] sm:$0x1] }
  0x29   : > { %v250_v25 = vrot.slane %v248_v12, 4  ;;  %v253_v26 = vrot.slane %v251_v13, 5  ;;  %v259_v27 = vrot.slane %v257_v14, 5  ;;  %v262_v28 = vshrl.u32 %v1207_v4, 16  ;;  %968 = vmatpush3.bf16.msra.mxu0 %v1020_v49  ;;  %v907_v12 = vld [vmem:[%s1104_s21 + $0x1c] sm:$0x1]  ;;  %992 = vmatpush3.bf16.msra.mxu1 %v1020_v49 }
  0x2a   : > { %464 = vrot.lane.b32.xlu0 %v917_v18, %s1062_s4  ;;  %v288_v30 = vsel %vm1181_vm2, %v283_v20, %v287_v3  ;;  %v297_v31 = vrot.slane %v296_v21, 4  ;;  %v265_v33 = vshll.u32 %v1207_v4, 16  ;;  %v271_v34 = vshll.u32 %v185_v10, 16  ;;  %v908_v21 = vld [vmem:[%s1104_s21 + $0x24] sm:$0x1] }
  0x2b   : > { %v254_v36 = vor.u32 %v253_v26, %v250_v25  ;;  %v264_v40 = vrot.slane %v262_v28, 4  ;;  %v386_v44 = vshll.u32 %v909_v15, 16  ;;  %v400_v48 = vshll.u32 %v910_v23, 16 }
  0x2c   : > { %v302_v50 = vsel %vm1181_vm2, %v297_v31, %v301_v22  ;;  %v267_v51 = vrot.slane %v265_v33, 5  ;;  %v273_v54 = vrot.slane %v271_v34, 5  ;;  %v330_v55 = vshll.u32 %v905_v24, 16 }
  0x2d   : > { %v920_v56 = vcombine.low %v288_v30, %v302_v50  ;;  %v255_v59 = vrot.slane %v254_v36, 4  ;;  %v388_v60 = vrot.slane %v386_v44, 5  ;;  %v402_v0 = vrot.slane %v400_v48, 5 }
  0x2e   : > { %v268_v1 = vor.u32 %v267_v51, %v264_v40  ;;  %v332_v2 = vrot.slane %v330_v55, 5  ;;  %v344_v3 = vshll.u32 %v906_v29, 16  ;;  %v411_v6 = vor.u32 %v1129_v39, %v1127_v38 }
  0x2f   : > { %470 = vrot.lane.b32.xlu1 %v920_v56, %s1062_s4  ;;  %v260_v8 = vsel %vm1181_vm2, %v255_v59, %v259_v27  ;;  %v389_v9 = vsel %vm1181_vm2, %v1134_v42, %v388_v60  ;;  %v403_v10 = vsel %vm1181_vm2, %v1125_v37, %v402_v0  ;;  %v414_v11 = vshll.u32 %v911_v35, 16 }
  0x30   : > { %v269_v13 = vrot.slane %v268_v1, 4  ;;  %v927_v38 = vcombine.low %v389_v9, %v403_v10  ;;  %v333_v39 = vsel %vm1181_vm2, %v1146_v52, %v332_v2  ;;  %v346_v14 = vrot.slane %v344_v3, 5 }
  0x31   : > { %v412_v15 = vrot.slane %v411_v6, 4  ;;  %v416_v16 = vrot.slane %v414_v11, 5  ;;  %v425_v18 = vor.u32 %v1143_v47, %v1138_v45  ;;  %v428_v42 = vshll.u32 %v912_v5, 16  ;;  %v929_v5 = vld [vmem:[%s1436_s2] ss:$0 sm:$0xff] }
  0x32   : > { %v274_v20 = vsel %vm1181_vm2, %v269_v13, %v273_v54  ;;  %v347_v37 = vsel %vm1181_vm2, %v1136_v43, %v346_v14  ;;  %v355_v22 = vor.u32 %v1152_v58, %v1150_v57  ;;  %v358_v23 = vshll.u32 %v907_v12, 16 }
  0x33   : > { %v919_v52 = vcombine.low %v260_v8, %v274_v20  ;;  %516 = vrot.lane.b32.xlu1 %v927_v38, %s1063_s9  ;;  %v925_v24 = vcombine.low %v333_v39, %v347_v37  ;;  %v417_v45 = vsel %vm1181_vm2, %v412_v15, %v416_v16  ;;  %v426_v47 = vrot.slane %v425_v18, 4 }
  0x34   : > { %v430_v25 = vrot.slane %v428_v42, 5  ;;  %v356_v26 = vrot.slane %v355_v22, 4  ;;  %v360_v27 = vrot.slane %v358_v23, 5  ;;  %v369_v28 = vor.u32 %v1161_v63, %v1159_v62 }
  0x35   : > { %468 = vrot.lane.b32.xlu0 %v919_v52, %s1062_s4  ;;  %v372_v43 = vshll.u32 %v908_v21, 16  ;;  %v914_v57 = vcombine.low %v1132_v41, %v1141_v46  ;;  %v913_v58 = vcombine.low %v1157_v61, %v1168_v7  ;;  %v916_v29 = vcombine.low %v1174_v17, %v1189_v32 }
  0x36   : > { %v431_v30 = vsel %vm1181_vm2, %v426_v47, %v430_v25  ;;  %v370_v31 = vrot.slane %v369_v28, 4  ;;  %v915_v33 = vcombine.low %v1197_v53, %v1207_v4  ;;  %v361_v63 = vsel %vm1181_vm2, %v356_v26, %v360_v27 }
  0x37   : > { %v928_v62 = vcombine.low %v417_v45, %v431_v30  ;;  %v374_v34 = vrot.slane %v372_v43, 5 }
  0x39   : > { %512 = vrot.lane.b32.xlu0 %v925_v24, %s1063_s9  ;;  %518 = vrot.lane.b32.xlu1 %v928_v62, %s1063_s9  ;;  %v375_v41 = vsel %vm1181_vm2, %v370_v31, %v374_v34  ;;  %v691_v31 = vlaneseq }
  0x3a   : > { %v926_v46 = vcombine.low %v361_v63, %v375_v41 }
  0x3b   : > { %v692_v34 = vand.u32 127, %v691_v31 }
  0x3d   : > { %514 = vrot.lane.b32.xlu0 %v926_v46, %s1063_s9 }
  0x84   : > { %v497_v61 = vpop.permute.xlu1 %496 }
  0x86   : > { %v493_v7 = vpop.permute.xlu0 %492 }
  0x8c   : > { %v499_v17 = vpop.permute.xlu1 %498 }
  0x8d   : > { %v495_v32 = vpop.permute.xlu0 %494 }
  0x99   : > { %v467_v35 = vpop.permute.xlu1 %466 }
  0x9a   : > { %v526_v59 = vsel %vm520_vm3, %v914_v57, %v467_v35 }
  0x9b   : > { %v537_v2 = vsel %vm533_vm5, %v526_v59, %v495_v32 }
  0x9c   : > { %v465_v36 = vpop.permute.xlu0 %464 }
  0x9d   : > { %v523_v44 = vsel %vm520_vm3, %v913_v58, %v465_v36  ;;  %v697_v36 = vand.u32 31, %v692_v34 }
  0x9e   : > { %v535_v54 = vsel %vm533_vm5, %v523_v44, %v493_v7 }
  0x9f   : > { %vm1319_vm6 = vcmp.ge.s32.totalorder %v697_v36, 2 }
  0xa1   : > { %v471_v40 = vpop.permute.xlu1 %470 }
  0xa2   : > { %v532_v48 = vsel %vm520_vm3, %v916_v29, %v471_v40 }
  0xa3   : > { %v541_v56 = vsel %vm533_vm5, %v532_v48, %v499_v17 }
  0xa5   : > { %v517_v53 = vpop.permute.xlu1 %516 }
  0xa7   : > { %v469_v4 = vpop.permute.xlu0 %468 }
  0xa8   : > { %v529_v49 = vsel %vm520_vm3, %v915_v33, %v469_v4 }
  0xa9   : > { %v539_v50 = vsel %vm533_vm5, %v529_v49, %v497_v61 }
  0xaa   : > { %v550_v19 = vsel %vm542_vm4, %v539_v50, %v517_v53 }
  0xab   : > { %v513_v51 = vpop.permute.xlu0 %512  ;;  %973 = vmatprep.mubr.bf16.mxu1 %v550_v19  ;;  %v519_v55 = vpop.permute.xlu1 %518 }
  0xac   : > { %v544_v60 = vsel %vm542_vm4, %v535_v54, %v513_v51  ;;  %v553_v0 = vsel %vm542_vm4, %v541_v56, %v519_v55 }
  0xad   : > { %969 = vmatprep.mubr.bf16.mxu0 %v544_v60  ;;  %974 = vmatmul.mubr.bf16.vlgmr.msra.gmra.mxu1 %v553_v0 }
  0xaf   : > { %v515_v1 = vpop.permute.xlu0 %514 }
  0xb0   : > { %v547_v3 = vsel %vm542_vm4, %v537_v2, %v515_v1 }
  0xb1   : > { %970 = vmatmul.mubr.bf16.vlgmr.msra.gmra.mxu0 %v547_v3 }
 0x16d   : > { %v975_v6 = vpop.f32.mrf.mxu1 }
 0x16e   : > { %v1285_v8 = vadd.f32 %v975_v6, %v929_v5 }
 0x16f   : > { %v676_v9 = vpop.f32.mrf.mxu1 }
 0x170   : > { %v720_v10 = vmin.f32 %v1285_v8, 20.0  ;;  %v1288_v11 = vadd.f32 %v929_v5, %v676_v9  ;;  %vm712_vm7 = vcmp.gt.f32.partialorder %v1285_v8, 20.0 }
 0x171   : > { %v971_v12 = vpop.f32.mrf.mxu0  ;;  %v976_v13 = vpop.f32.mrf.mxu1 }
 0x172   : > { %v1290_v38 = vadd.f32 %v971_v12, %v929_v5  ;;  %v734_v39 = vmul.f32 1.442695, %v720_v10  ;;  %v718_v14 = vmin.f32 %v1288_v11, 20.0  ;;  %v1293_v16 = vadd.f32 %v976_v13, %v929_v5 }
 0x173   : > { %v660_v15 = vpop.f32.mrf.mxu0  ;;  %v679_v18 = vpop.f32.mrf.mxu1  ;;  %vm710_vm9 = vcmp.gt.f32.partialorder %v1288_v11, 20.0 }
 0x174   : > { %v716_v42 = vmin.f32 %v1290_v38, 20.0  ;;  %1021 = vpow2.f32 %v734_v39  ;;  %v1296_v20 = vadd.f32 %v929_v5, %v660_v15  ;;  %v730_v37 = vmul.f32 1.442695, %v718_v14 }
 0x175   : > { %v972_v21 = vpop.f32.mrf.mxu0  ;;  %v721_v22 = vmin.f32 %v1293_v16, 20.0  ;;  %v1299_v23 = vadd.f32 %v929_v5, %v679_v18  ;;  %vm708_vm8 = vcmp.gt.f32.partialorder %v1290_v38, 20.0  ;;  %vm713_vm12 = vcmp.gt.f32.partialorder %v1293_v16, 20.0 }
 0x176   : > { %v726_v52 = vmul.f32 1.442695, %v716_v42  ;;  %v714_v24 = vmin.f32 %v1296_v20, 20.0  ;;  %v1302_v45 = vadd.f32 %v972_v21, %v929_v5  ;;  %1023 = vpow2.f32 %v730_v37 }
 0x177   : > { %v736_v47 = vmul.f32 1.442695, %v721_v22  ;;  %v663_v25 = vpop.f32.mrf.mxu0  ;;  %v719_v26 = vmin.f32 %v1299_v23, 20.0  ;;  %vm706_vm13 = vcmp.gt.f32.partialorder %v1296_v20, 20.0 }
 0x178   : > { %1025 = vpow2.f32 %v726_v52  ;;  %v722_v27 = vmul.f32 1.442695, %v714_v24  ;;  %v717_v28 = vmin.f32 %v1302_v45, 20.0  ;;  %v1306_v43 = vadd.f32 %v929_v5, %v663_v25 }
 0x179   : > { %1027 = vpow2.f32 %v736_v47  ;;  %v732_v57 = vmul.f32 1.442695, %v719_v26  ;;  %vm709_vm2 = vcmp.gt.f32.partialorder %v1302_v45, 20.0 }
 0x17a   : > { %1029 = vpow2.f32 %v722_v27  ;;  %v728_v58 = vmul.f32 1.442695, %v717_v28  ;;  %v715_v29 = vmin.f32 %v1306_v43, 20.0  ;;  %vm707_vm4 = vcmp.gt.f32.partialorder %v1306_v43, 20.0 }
 0x17b   : > { %1031 = vpow2.f32 %v732_v57 }
 0x17c   : > { %1033 = vpow2.f32 %v728_v58  ;;  %v724_v30 = vmul.f32 1.442695, %v715_v29 }
 0x17e   : > { %1035 = vpow2.f32 %v724_v30 }
 0x181   : > { %v1022_v33 = vpop.eup %1021 }
 0x182   : > { %v792_v62 = vadd.f32 1.0, %v1022_v33  ;;  %v795_v4 = vmul.f32 -0.5, %v1022_v33  ;;  %v798_v54 = vand.u32 2147483647, %v1022_v33 }
 0x183   : > { %v1024_v63 = vpop.eup %1023 }
 0x184   : > { %1037 = vlog2.f32 %v792_v62  ;;  %v774_v46 = vadd.f32 1.0, %v1024_v63  ;;  %v777_v49 = vmul.f32 -0.5, %v1024_v63  ;;  %v780_v56 = vand.u32 2147483647, %v1024_v63 }
 0x185   : > { %v1026_v41 = vpop.eup %1025  ;;  %v796_v0 = vadd.f32 1.0, %v795_v4  ;;  %vm1331_vm10 = vcmp.lt.f32.partialorder %v798_v54, 0.0004427343 }
 0x186   : > { %v1309_v61 = vpop.eup %1027  ;;  %v756_v7 = vadd.f32 1.0, %v1026_v41  ;;  %1039 = vlog2.f32 %v774_v46  ;;  %v759_v48 = vmul.f32 -0.5, %v1026_v41  ;;  %v762_v60 = vand.u32 2147483647, %v1026_v41 }
 0x187   : > { %v1030_v17 = vpop.eup %1029  ;;  %v801_v32 = vadd.f32 1.0, %v1309_v61  ;;  %v778_v3 = vadd.f32 1.0, %v777_v49  ;;  %v804_v5 = vmul.f32 -0.5, %v1309_v61  ;;  %vm1335_vm11 = vcmp.lt.f32.partialorder %v780_v56, 0.0004427343 }
 0x188   : > { %v1312_v35 = vpop.eup %1031  ;;  %1041 = vlog2.f32 %v756_v7  ;;  %v738_v40 = vadd.f32 1.0, %v1030_v17  ;;  %v741_v55 = vmul.f32 -0.5, %v1030_v17  ;;  %v760_v2 = vadd.f32 1.0, %v759_v48 }
 0x189   : > { %v1314_v53 = vpop.eup %1033  ;;  %1043 = vlog2.f32 %v801_v32  ;;  %v783_v51 = vadd.f32 1.0, %v1312_v35  ;;  %v744_v6 = vand.u32 2147483647, %v1030_v17  ;;  %v797_v14 = vmul.f32 %v1022_v33, %v796_v0 }
 0x18a   : > { %1045 = vlog2.f32 %v738_v40  ;;  %v765_v44 = vadd.f32 1.0, %v1314_v53  ;;  %v768_v1 = vmul.f32 -0.5, %v1314_v53  ;;  %v742_v12 = vadd.f32 1.0, %v741_v55 }
 0x18b   : > { %v1317_v50 = vpop.eup %1035  ;;  %v807_v18 = vand.u32 2147483647, %v1309_v61  ;;  %v761_v42 = vmul.f32 %v1026_v41, %v760_v2  ;;  %vm1342_vm14 = vcmp.lt.f32.partialorder %v762_v60, 0.0004427343  ;;  %v779_v21 = vmul.f32 %v1024_v63, %v778_v3 }
 0x18c   : > { %1047 = vlog2.f32 %v765_v44  ;;  %v747_v59 = vadd.f32 1.0, %v1317_v50  ;;  %v769_v15 = vadd.f32 1.0, %v768_v1  ;;  %v805_v22 = vadd.f32 1.0, %v804_v5 }
 0x18d   : > { %vm1353_vm15 = vcmp.lt.f32.partialorder %v744_v6, 0.0004427343  ;;  %v771_v25 = vand.u32 2147483647, %v1314_v53  ;;  %v750_v26 = vmul.f32 -0.5, %v1317_v50  ;;  %v743_v57 = vmul.f32 %v1030_v17, %v742_v12 }
 0x18e   : > { %1049 = vlog2.f32 %v747_v59  ;;  %v786_v29 = vmul.f32 -0.5, %v1312_v35  ;;  %v770_v62 = vmul.f32 %v1314_v53, %v769_v15  ;;  %vm1367_vm0 = vcmp.lt.f32.partialorder %v807_v18, 0.0004427343 }
 0x18f   : > { %1051 = vlog2.f32 %v783_v51  ;;  %v806_v7 = vmul.f32 %v1309_v61, %v805_v22  ;;  %v753_v17 = vand.u32 2147483647, %v1317_v50  ;;  %v751_v40 = vadd.f32 1.0, %v750_v26 }
 0x190   : > { %v787_v48 = vadd.f32 1.0, %v786_v29  ;;  %vm772_vm1 = vcmp.lt.f32.partialorder %v771_v25, 0.0004427343  ;;  %v789_v56 = vand.u32 2147483647, %v1312_v35 }
 0x191   : > { %v1038_v9 = vpop.eup %1037  ;;  %vm754_vm3 = vcmp.lt.f32.partialorder %v753_v17, 0.0004427343 }
 0x192   : > { %v794_v39 = vmul.f32 0.6931472, %v1038_v9  ;;  %vm790_vm5 = vcmp.lt.f32.partialorder %v789_v56, 0.0004427343 }
 0x193   : > { %v1040_v52 = vpop.eup %1039 }
 0x194   : > { %v800_v24 = vsel %vm1331_vm10, %v797_v14, %v794_v39  ;;  %v776_v58 = vmul.f32 0.6931472, %v1040_v52 }
 0x195   : > { %v1042_v27 = vpop.eup %1041  ;;  %v816_v28 = vsel %vm712_vm7, %v1285_v8, %v800_v24  ;;  %vm711_vm7 = vcmp.gt.f32.partialorder %v1299_v23, 20.0 }
 0x196   : > { %v1044_v30 = vpop.eup %1043  ;;  %v758_v31 = vmul.f32 0.6931472, %v1042_v27  ;;  %v824_v33 = vsel %vm1319_vm6, %v816_v28, %v1285_v8  ;;  %v782_v41 = vsel %vm1335_vm11, %v779_v21, %v776_v58 }
 0x197   : > { %v1046_v34 = vpop.eup %1045  ;;  %832 = vst [vmem:[%s1349_s16 + $0x30] sm:$0xff] %v824_v33  ;;  %v803_v46 = vmul.f32 0.6931472, %v1044_v30  ;;  %v814_v36 = vsel %vm710_vm9, %v1288_v11, %v782_v41 }
 0x198   : > { %v764_v8 = vsel %vm1342_vm14, %v761_v42, %v758_v31  ;;  %v740_v32 = vmul.f32 0.6931472, %v1046_v34  ;;  %v822_v61 = vsel %vm1319_vm6, %v814_v36, %v1288_v11 }
 0x199   : > { %v1048_v53 = vpop.eup %1047  ;;  %v812_v4 = vsel %vm708_vm8, %v1290_v38, %v764_v8  ;;  %v809_v44 = vsel %vm1367_vm0, %v806_v7, %v803_v46  ;;  %830 = vst [vmem:[%s1349_s16 + $0x20] sm:$0xff] %v822_v61 }
 0x19a   : > { %v820_v49 = vsel %vm1319_vm6, %v812_v4, %v1290_v38  ;;  %v746_v51 = vsel %vm1353_vm15, %v743_v57, %v740_v32  ;;  %v767_v54 = vmul.f32 0.6931472, %v1048_v53  ;;  %v817_v55 = vsel %vm713_vm12, %v1293_v16, %v809_v44 }
 0x19b   : > { %828 = vst [vmem:[%s1349_s16 + $0x10] sm:$0xff] %v820_v49  ;;  %v810_v11 = vsel %vm706_vm13, %v1296_v20, %v746_v51  ;;  %v825_v38 = vsel %vm1319_vm6, %v817_v55, %v1293_v16  ;;  %v1050_v59 = vpop.eup %1049  ;;  %v752_v16 = vmul.f32 %v1317_v50, %v751_v40 }
 0x19c   : > { %v818_v60 = vsel %vm1319_vm6, %v810_v11, %v1296_v20  ;;  %v773_v0 = vsel %vm772_vm1, %v770_v62, %v767_v54  ;;  %833 = vst [vmem:[%s1349_s16 + $0x38] sm:$0xff] %v825_v38  ;;  %v1052_v1 = vpop.eup %1051  ;;  %v749_v3 = vmul.f32 0.6931472, %v1050_v59  ;;  %v788_v20 = vmul.f32 %v1312_v35, %v787_v48 }
 0x19d   : > { %826 = vst [vmem:[%s1349_s16] sm:$0xff] %v818_v60  ;;  %v813_v2 = vsel %vm709_vm2, %v1302_v45, %v773_v0  ;;  %v785_v6 = vmul.f32 0.6931472, %v1052_v1 }
 0x19e   : > { %v821_v5 = vsel %vm1319_vm6, %v813_v2, %v1302_v45  ;;  %v755_v9 = vsel %vm754_vm3, %v752_v16, %v749_v3 }
 0x19f   : > { %829 = vst [vmem:[%s1349_s16 + $0x18] sm:$0xff] %v821_v5  ;;  %v811_v10 = vsel %vm707_vm4, %v1306_v43, %v755_v9  ;;  %v791_v12 = vsel %vm790_vm5, %v788_v20, %v785_v6 }
 0x1a0   : > { %v819_v50 = vsel %vm1319_vm6, %v811_v10, %v1306_v43  ;;  %v815_v45 = vsel %vm711_vm7, %v1299_v23, %v791_v12 }
 0x1a1   : > { %827 = vst [vmem:[%s1349_s16 + $0x8] sm:$0xff] %v819_v50  ;;  %v823_v35 = vsel %vm1319_vm6, %v815_v45, %v1299_v23 }
 0x1a2   : > { %831 = vst [vmem:[%s1349_s16 + $0x28] sm:$0xff] %v823_v35 }
 0x1a3 PF: > { %s13_s12 = sadd.s32 1, %s1059_s12  }
 0x1a4   : > { %p10_p4 = scmp.ge.s32.totalorder %s13_s12, 4  }
 0x1a6   :  { %12 = sbr.rel (!%p10_p4) target bundleno = 1 (0x1), region = 63 }

</bundles_post_ra>
